<compile_context>
chip_gen: v7x
topology: tpu7x:2x2x1
jax: 0.10.0
libtpu: 0.0.40
codegen_flags: <defaults>
</compile_context>

<pallas_src>
import jax
import jax.numpy as jnp
from jax.experimental import pallas as pl
from jax.experimental.pallas import tpu as pltpu

NEG = -1e30  # additive mask value (kills entries in max / log-sum-exp)


def convkim_kernel(w_ref, cw_ref, bm_ref, lw_ref, lb_ref, out_ref):
    TB, L, F = w_ref.shape
    K, Cpad = cw_ref.shape
    maxwin = K // F
    TBL = TB * L

    # Batch-collapsed feature slab.  Streamed bf16; upcast once to f32 for the
    # sublane rolls (avoids packed-sublane rotate), downcast per column so the
    # lane-misaligned concat happens in bf16.
    w_bf = w_ref[...].reshape(TBL, F)                       # (TBL, F) bf16
    w_f32 = w_bf.astype(jnp.float32)

    # im2col: column block dt holds w shifted by dt along time (roll == -dt).
    # Wrapped rows only land at t >= fo per branch and are masked before max.
    cols = [w_bf]
    for dt in range(1, maxwin):
        cols.append(
            pltpu.roll(w_f32, shift=TBL - dt, axis=0).astype(jnp.bfloat16))
    x = jnp.concatenate(cols, axis=-1)                      # (TBL, K) bf16

    # Fused conv over all branches: single MXU matmul, K reduction inside.
    h = jnp.dot(x, cw_ref[...], preferred_element_type=jnp.float32)  # (TBL,Cpad)

    # Bias + per-channel valid-time mask folded into one additive (L, Cpad)
    # term, applied before ReLU; masked rows clamp to 0 and never win the max.
    h = jnp.maximum(h.reshape(TB, L, Cpad) + bm_ref[...][None, :, :], 0.0)
    pooled = jnp.max(h, axis=1)                             # (TB, Cpad) f32

    # Linear -> LogSoftmax(dim=1).  Tiny matmul kept in f32; padded class
    # columns carry a -1e30 bias so they drop out of max / log-sum-exp.
    y = jnp.dot(pooled, lw_ref[...], preferred_element_type=jnp.float32)
    y = y + lb_ref[...]                                     # (TB, Npad)
    m = jnp.max(y, axis=1, keepdims=True)
    lse = m + jnp.log(jnp.sum(jnp.exp(y - m), axis=1, keepdims=True))
    out_ref[...] = (y - lse).astype(out_ref.dtype)


def convkim_pallas(w, conv_ws, conv_bs, lin_w, lin_b, *, batch_tile=None):
    """w: (B, L, F) float; conv_ws[i]: (win_i, F, C_i); conv_bs[i]: (1, C_i);
    lin_w: (Csum, nclasses); lin_b: (1, nclasses)."""
    B, L, F = w.shape
    nclasses = lin_w.shape[1]
    wins = [cw.shape[0] for cw in conv_ws]
    csizes = [cw.shape[2] for cw in conv_ws]
    maxwin = max(wins)
    csum = sum(csizes)
    assert L - maxwin + 1 >= 1, "maxseqlen too short for the conv windows"
    assert lin_w.shape[0] == csum

    K = maxwin * F
    Cpad = max(128, ((csum + 127) // 128) * 128)      # lane-align fused channels
    Npad = max(128, ((nclasses + 127) // 128) * 128)  # lane-dense output store

    # Fused conv weight (window taps along K, branches along N) plus the fused
    # bias+valid-time additive term (bias on valid rows, -1e30 on masked rows).
    cw_cat = jnp.zeros((K, Cpad), jnp.float32)
    cb_full = jnp.zeros((Cpad,), jnp.float32)
    fo_per_c = jnp.full((Cpad,), L, jnp.int32)        # padded channels: all valid
    off = 0
    for cw, cb, win, c in zip(conv_ws, conv_bs, wins, csizes):
        fo = L - win + 1
        assert fo >= 1
        # Wrap safety: nonzero taps of this branch occupy dt in [0, win-1], so
        # pltpu.roll's cross-batch wrap can only contaminate rows
        # t >= L - (win - 1) = fo, every one of which is masked to -1e30 below.
        assert win <= maxwin
        cw_cat = cw_cat.at[:win * F, off:off + c].set(cw.reshape(win * F, c))
        cb_full = cb_full.at[off:off + c].set(cb.reshape(c))
        fo_per_c = fo_per_c.at[off:off + c].set(fo)
        off += c
    bm = jnp.where(jnp.arange(L)[:, None] < fo_per_c[None, :],
                   cb_full[None, :], jnp.float32(NEG)).astype(jnp.float32)

    lw_pad = jnp.zeros((Cpad, Npad), jnp.float32).at[:csum, :nclasses].set(
        lin_w.astype(jnp.float32))
    lb_pad = jnp.full((1, Npad), NEG, jnp.float32).at[:, :nclasses].set(
        lin_b.reshape(1, nclasses).astype(jnp.float32))

    # bf16 MXU operands for the big conv matmul (accumulation is f32).
    cw_cat = cw_cat.astype(jnp.bfloat16)

    # Batch tiling: ~2K im2col rows per step (amortizes per-step overhead and
    # fills the MXU M dim) while keeping >=2 "parallel" grid steps so v7x's two
    # TensorCores both get work.  VMEM is not the constraint at these sizes.
    if batch_tile is None:
        target_tb = max(8, (2048 // L) // 8 * 8)
        half_b = -(-B // 2)                   # ceil(B / 2): keep >= 2 steps
        half_b = -(-half_b // 8) * 8          # round up to a sublane multiple
        TB = max(8, min(target_tb, half_b))
    else:
        TB = batch_tile
    assert TB % 8 == 0
    Bp = ((B + TB - 1) // TB) * TB

    # Stream the only per-step operand as bf16 (halves its HBM traffic).
    w_bf = w.astype(jnp.bfloat16)
    if Bp != B:
        w_bf = jnp.pad(w_bf, ((0, Bp - B), (0, 0), (0, 0)))

    # Note: the four grid-invariant operands keep the default double-buffering;
    # their footprint is tiny here.  If TB is ever pushed to multi-thousand
    # rows, consider pipeline_mode=pl.Buffered(1) on them (and Buffered(3) on
    # the w spec if its DMA becomes exposed).
    logprobs = pl.pallas_call(
        convkim_kernel,
        out_shape=jax.ShapeDtypeStruct((Bp, Npad), jnp.float32),
        grid=(Bp // TB,),
        in_specs=[
            pl.BlockSpec((TB, L, F), lambda b: (b, 0, 0)),        # features bf16
            pl.BlockSpec((K, Cpad), lambda b: (0, 0)),            # fused conv W
            pl.BlockSpec((L, Cpad), lambda b: (0, 0)),            # bias+time mask
            pl.BlockSpec((Cpad, Npad), lambda b: (0, 0)),         # linear W (f32)
            pl.BlockSpec((1, Npad), lambda b: (0, 0)),            # linear b+mask
        ],
        out_specs=pl.BlockSpec((TB, Npad), lambda b: (b, 0)),
        compiler_params=pltpu.CompilerParams(
            dimension_semantics=("parallel",)),
    )(w_bf, cw_cat, bm, lw_pad, lb_pad)
    return logprobs[:B, :nclasses]


def build_features(params, seq, seqposi, seqposi_rev):
    s = params["word_emb"][seq]            # (B, L, emsize_word)
    p1 = params["posi_emb"][seqposi]       # (B, L, emsize_posi)
    p2 = params["posi_emb"][seqposi_rev]   # (B, L, emsize_posi)
    return jnp.concatenate([s, p1, p2], axis=2).astype(jnp.float32)


def convkim_forward(params, seq, seqposi, seqposi_rev):
    """Embedding lookups + feature concat (plain JAX glue), then the kernel.
    Returns (logprobs, 0) to match the PyTorch module."""
    # TODO(synk): dropout layers are identity (eval-mode forward only).
    w = build_features(params, seq, seqposi, seqposi_rev)   # context_window = 0
    logprobs = convkim_pallas(w, params["conv_w"], params["conv_b"],
                              params["lin_w"], params["lin_b"])
    return logprobs, 0


def convkim_reference(w, conv_ws, conv_bs, lin_w, lin_b):
    """Pure-JAX f32 reference of the eval-mode PyTorch forward."""
    B, L, _ = w.shape
    outs = []
    for cw, cb in zip(conv_ws, conv_bs):
        win = cw.shape[0]
        fo = L - win + 1
        acc = jnp.zeros((B, fo, cw.shape[2]), jnp.float32)
        for dt in range(win):
            acc = acc + jnp.einsum('btf,fc->btc', w[:, dt:dt + fo, :], cw[dt])
        acc = jnp.maximum(acc + cb[None, :, :], 0.0)
        outs.append(jnp.max(acc, axis=1))
    z = jnp.concatenate(outs, axis=1)
    y = z @ lin_w + lin_b
    return jax.nn.log_softmax(y, axis=1)


def make_params(key, *, ntoken, npositions, emsize_word, emsize_posi,
                convfilters, convwindows, nclasses):
    F = emsize_word + 2 * emsize_posi
    keys = jax.random.split(key, 4 + 2 * len(convfilters))
    initrange = 0.1
    params = {
        "word_emb": jax.random.uniform(keys[0], (ntoken, emsize_word),
                                       jnp.float32, -initrange, initrange),
        "posi_emb": jax.random.uniform(keys[1], (npositions, emsize_posi),
                                       jnp.float32, -initrange, initrange),
    }
    conv_w, conv_b = [], []
    for i, (c, win) in enumerate(zip(convfilters, convwindows)):
        fan_in = win * F
        bound = 1.0 / (fan_in ** 0.5)
        # stored as (win, F, C) == PyTorch conv weight (C, 1, win, F) transposed
        conv_w.append(jax.random.uniform(keys[2 + 2 * i], (win, F, c),
                                         jnp.float32, -bound, bound))
        conv_b.append(jax.random.uniform(keys[3 + 2 * i], (1, c),
                                         jnp.float32, -bound, bound))
    params["conv_w"] = conv_w
    params["conv_b"] = conv_b
    csum = sum(convfilters)
    bound = 1.0 / (csum ** 0.5)
    params["lin_w"] = jax.random.uniform(keys[-2], (csum, nclasses),
                                         jnp.float32, -bound, bound)
    params["lin_b"] = jax.random.uniform(keys[-1], (1, nclasses),
                                         jnp.float32, -bound, bound)
    return params


if __name__ == "__main__":
    # Small, module-consistent shapes (batch chosen to exercise a 2-step grid).
    B = 16
    ntoken = 100
    nclasses = 8
    maxseqlen = 16          # context_window = 0 -> li = 16
    npositions = 32
    emsize_word = 32
    emsize_posi = 8
    convfilters = [64, 64, 64]
    convwindows = [3, 4, 5]

    key = jax.random.PRNGKey(0)
    pkey, skey = jax.random.split(key)
    params = make_params(pkey, ntoken=ntoken, npositions=npositions,
                         emsize_word=emsize_word, emsize_posi=emsize_posi,
                         convfilters=convfilters, convwindows=convwindows,
                         nclasses=nclasses)

    seq = jax.random.randint(skey, (B, maxseqlen), 0, ntoken, jnp.int32)
    seqposi = jnp.broadcast_to(jnp.arange(maxseqlen, dtype=jnp.int32),
                               (B, maxseqlen))
    seqposi_rev = seqposi[:, ::-1]

    logprobs, aux = convkim_forward(params, seq, seqposi, seqposi_rev)
    logprobs = jax.block_until_ready(logprobs)

    assert logprobs.shape == (B, nclasses)
    assert aux == 0
    # Log-softmax rows must sum (in prob space) to ~1.
    assert jnp.allclose(jnp.sum(jnp.exp(logprobs), axis=1), 1.0, atol=1e-4)
    # Check against the pure-JAX f32 reference (bf16 features / conv weights
    # on the MXU -> loose tolerance; linear + softmax stay f32).
    w_feat = build_features(params, seq, seqposi, seqposi_rev)
    ref = convkim_reference(w_feat, params["conv_w"], params["conv_b"],
                            params["lin_w"], params["lin_b"])
    assert jnp.allclose(logprobs, ref, atol=5e-2), float(
        jnp.max(jnp.abs(logprobs - ref)))
    print("KERNEL_OK")
</pallas_src>

<mosaic_0001>
module attributes {stable_mosaic.version = 11 : i64} {
  func.func @convkim_kernel(%arg0: i32, %arg1: memref<8x16x48xbf16, #tpu.memory_space<vmem>>, %arg2: memref<240x256xbf16, #tpu.memory_space<vmem>>, %arg3: memref<16x256xf32, #tpu.memory_space<vmem>>, %arg4: memref<256x128xf32, #tpu.memory_space<vmem>>, %arg5: memref<1x128xf32, #tpu.memory_space<vmem>>, %arg6: memref<8x128xf32, #tpu.memory_space<vmem>>) attributes {dimension_semantics = [#tpu.dimension_semantics<parallel>], iteration_bounds = array<i64: 2>, scalar_prefetch = 0 : i64, scratch_operands = 0 : i64, tpu.core_type = #tpu.core_type<tc>, window_params = [{transform_indices = @transform_0, window_bounds = array<i64: 8, 16, 48>}, {pipeline_mode = #tpu.pipeline_mode<synchronous>, transform_indices = @transform_1, window_bounds = array<i64: 240, 256>}, {pipeline_mode = #tpu.pipeline_mode<synchronous>, transform_indices = @transform_2, window_bounds = array<i64: 16, 256>}, {pipeline_mode = #tpu.pipeline_mode<synchronous>, transform_indices = @transform_3, window_bounds = array<i64: 256, 128>}, {pipeline_mode = #tpu.pipeline_mode<synchronous>, transform_indices = @transform_4, window_bounds = array<i64: 1, 128>}, {transform_indices = @transform_5, window_bounds = array<i64: 8, 128>}]} {
    %c0 = arith.constant 0 : index
    %c0_0 = arith.constant 0 : index
    %c0_1 = arith.constant 0 : index
    %0 = vector.load %arg1[%c0, %c0_0, %c0_1] : memref<8x16x48xbf16, #tpu.memory_space<vmem>>, vector<8x16x48xbf16>
    %1 = vector.shape_cast %0 : vector<8x16x48xbf16> to vector<128x48xbf16>
    %2 = arith.extf %1 : vector<128x48xbf16> to vector<128x48xf32>
    %c127_i32 = arith.constant 127 : i32
    %3 = tpu.dynamic_rotate %2 by %c127_i32 dim 0 : vector<128x48xf32>, i32 -> vector<128x48xf32>
    %4 = arith.truncf %3 : vector<128x48xf32> to vector<128x48xbf16>
    %c126_i32 = arith.constant 126 : i32
    %5 = tpu.dynamic_rotate %2 by %c126_i32 dim 0 : vector<128x48xf32>, i32 -> vector<128x48xf32>
    %6 = arith.truncf %5 : vector<128x48xf32> to vector<128x48xbf16>
    %c125_i32 = arith.constant 125 : i32
    %7 = tpu.dynamic_rotate %2 by %c125_i32 dim 0 : vector<128x48xf32>, i32 -> vector<128x48xf32>
    %8 = arith.truncf %7 : vector<128x48xf32> to vector<128x48xbf16>
    %c124_i32 = arith.constant 124 : i32
    %9 = tpu.dynamic_rotate %2 by %c124_i32 dim 0 : vector<128x48xf32>, i32 -> vector<128x48xf32>
    %10 = arith.truncf %9 : vector<128x48xf32> to vector<128x48xbf16>
    %11 = tpu.concatenate %1, %4, %6, %8, %10 in 1 : vector<128x48xbf16>, vector<128x48xbf16>, vector<128x48xbf16>, vector<128x48xbf16>, vector<128x48xbf16> -> vector<128x240xbf16>
    %c0_2 = arith.constant 0 : index
    %c0_3 = arith.constant 0 : index
    %12 = vector.load %arg2[%c0_2, %c0_3] : memref<240x256xbf16, #tpu.memory_space<vmem>>, vector<240x256xbf16>
    %cst = arith.constant dense<0.000000e+00> : vector<128x256xf32>
    %13 = tpu.matmul %11, %12, %cst {dimension_numbers = #tpu.dot_dimension_numbers<[1], [0], [0], [1], [0, 0, 1, 1], [], []>} : vector<128x240xbf16>, vector<240x256xbf16>, vector<128x256xf32> -> vector<128x256xf32>
    %14 = vector.shape_cast %13 : vector<128x256xf32> to vector<8x16x256xf32>
    %c0_4 = arith.constant 0 : index
    %c0_5 = arith.constant 0 : index
    %15 = vector.load %arg3[%c0_4, %c0_5] : memref<16x256xf32, #tpu.memory_space<vmem>>, vector<16x256xf32>
    %16 = vector.shape_cast %15 : vector<16x256xf32> to vector<1x16x256xf32>
    %17 = vector.broadcast %16 : vector<1x16x256xf32> to vector<8x16x256xf32>
    %18 = arith.addf %14, %17 : vector<8x16x256xf32>
    %cst_6 = arith.constant 0.000000e+00 : f32
    %19 = vector.broadcast %cst_6 : f32 to vector<8x16x256xf32>
    %20 = arith.maximumf %18, %19 : vector<8x16x256xf32>
    %cst_7 = arith.constant dense<0xFF800000> : vector<8x256xf32>
    %21 = vector.multi_reduction <maximumf>, %20, %cst_7 [1] : vector<8x16x256xf32> to vector<8x256xf32>
    %c0_8 = arith.constant 0 : index
    %c0_9 = arith.constant 0 : index
    %22 = vector.load %arg4[%c0_8, %c0_9] : memref<256x128xf32, #tpu.memory_space<vmem>>, vector<256x128xf32>
    %cst_10 = arith.constant dense<0.000000e+00> : vector<8x128xf32>
    %23 = tpu.matmul %21, %22, %cst_10 {dimension_numbers = #tpu.dot_dimension_numbers<[1], [0], [0], [1], [0, 0, 1, 1], [], []>} : vector<8x256xf32>, vector<256x128xf32>, vector<8x128xf32> -> vector<8x128xf32>
    %c0_11 = arith.constant 0 : index
    %c0_12 = arith.constant 0 : index
    %24 = vector.load %arg5[%c0_11, %c0_12] : memref<1x128xf32, #tpu.memory_space<vmem>>, vector<1x128xf32>
    %25 = vector.broadcast %24 : vector<1x128xf32> to vector<8x128xf32>
    %26 = arith.addf %23, %25 : vector<8x128xf32>
    %cst_13 = arith.constant dense<0xFF800000> : vector<8xf32>
    %27 = vector.multi_reduction <maximumf>, %26, %cst_13 [1] : vector<8x128xf32> to vector<8xf32>
    %28 = vector.shape_cast %27 : vector<8xf32> to vector<8x1xf32>
    %29 = vector.broadcast %28 : vector<8x1xf32> to vector<8x128xf32>
    %30 = arith.subf %26, %29 : vector<8x128xf32>
    %31 = math.exp %30 : vector<8x128xf32>
    %cst_14 = arith.constant dense<0.000000e+00> : vector<8xf32>
    %32 = vector.multi_reduction <add>, %31, %cst_14 [1] : vector<8x128xf32> to vector<8xf32>
    %33 = vector.shape_cast %32 : vector<8xf32> to vector<8x1xf32>
    %34 = math.log %33 : vector<8x1xf32>
    %35 = arith.addf %28, %34 : vector<8x1xf32>
    %36 = vector.broadcast %35 : vector<8x1xf32> to vector<8x128xf32>
    %37 = arith.subf %26, %36 : vector<8x128xf32>
    %c0_15 = arith.constant 0 : index
    %c0_16 = arith.constant 0 : index
    %38 = vector.load %arg6[%c0_15, %c0_16] : memref<8x128xf32, #tpu.memory_space<vmem>>, vector<8x128xf32>
    tpu.vector_store %arg6[%c0_15, %c0_16], %37 {strides = array<i32>} : memref<8x128xf32, #tpu.memory_space<vmem>>, vector<8x128xf32>,
    return
  }
  func.func @transform_0(%arg0: i32) -> (i32, i32, i32) {
    %c0_i32 = arith.constant 0 : i32
    %c0_i32_0 = arith.constant 0 : i32
    %c0_i32_1 = arith.constant 0 : i32
    return %arg0, %c0_i32, %c0_i32_0 : i32, i32, i32
  }
  func.func @transform_1(%arg0: i32) -> (i32, i32) {
    %c0_i32 = arith.constant 0 : i32
    %c0_i32_0 = arith.constant 0 : i32
    %c0_i32_1 = arith.constant 0 : i32
    return %c0_i32, %c0_i32_0 : i32, i32
  }
  func.func @transform_2(%arg0: i32) -> (i32, i32) {
    %c0_i32 = arith.constant 0 : i32
    %c0_i32_0 = arith.constant 0 : i32
    %c0_i32_1 = arith.constant 0 : i32
    return %c0_i32, %c0_i32_0 : i32, i32
  }
  func.func @transform_3(%arg0: i32) -> (i32, i32) {
    %c0_i32 = arith.constant 0 : i32
    %c0_i32_0 = arith.constant 0 : i32
    %c0_i32_1 = arith.constant 0 : i32
    return %c0_i32, %c0_i32_0 : i32, i32
  }
  func.func @transform_4(%arg0: i32) -> (i32, i32) {
    %c0_i32 = arith.constant 0 : i32
    %c0_i32_0 = arith.constant 0 : i32
    %c0_i32_1 = arith.constant 0 : i32
    return %c0_i32, %c0_i32_0 : i32, i32
  }
  func.func @transform_5(%arg0: i32) -> (i32, i32) {
    %c0_i32 = arith.constant 0 : i32
    %c0_i32_0 = arith.constant 0 : i32
    return %arg0, %c0_i32 : i32, i32
  }
}

</mosaic_0001>

<bundles_post_ra>
// kernel: tpu_custom_call.1
= control target key start
LH: loop header
LB: loop body
LE: loop exit
PB: predicated region body
PF: predicated region fallthrough
CT: control target
= control target key end

     0   :  { %10 = vsyncpa [#allocation3], 0  ;;  %s2810_s0 = inlined_call_operand.hbm [shape: bf16[16,16,48], index: 0, kind: input, shape index: {}]   ;;  %s2811_s1 = inlined_call_operand.hbm [shape: bf16[240,256], index: 1, kind: input, shape index: {}]   ;;  %s2812_s2 = inlined_call_operand.hbm [shape: f32[16,256], index: 2, kind: input, shape index: {}]   ;;  %s2813_s3 = inlined_call_operand.hbm [shape: f32[256,128], index: 3, kind: input, shape index: {}]   ;;  %s2814_s4 = inlined_call_operand.vmem [shape: f32[1,128], index: 4, kind: input, shape index: {}]   ;;  %s2815_s5 = inlined_call_operand.hbm [shape: f32[16,128], index: 5, kind: output, shape index: {}]  }
   0x1   :  { %12 = vsyncpa [#allocation3 + $0x1], 0 }
   0x2   :  { %13 = vsyncpa [#allocation6], 0 }
   0x3   :  { %14 = vsyncpa [#allocation9], 0 }
   0x4   :  { %15 = vsyncpa [#allocation4], 0 }
   0x5   :  { %17 = vsyncpa [#allocation4 + $0x1], 0  ;;  %s2024_s18 = smov 0   ;;  %s2026_s19 = smov 0  }
   0x6   :  { %s2028_s20 = smov 0   ;;  %s2030_s21 = smov 0  }
   0x7 LB: > { %s2045_s22 = sadd.s32 4294967295, %s1977_s21   ;;  %s1471_s23 = sadd.s32 4294967294, %s1977_s21   ;;  %s1977_s21 = sphi %s2030_s21, %s2842_s21   ;;  %s1973_s20 = sphi %s2028_s20, %s2841_s20   ;;  %s1969_s19 = sphi %s2026_s19, %s2840_s19   ;;  %s1965_s18 = sphi %s2024_s18, %s2839_s18  }
   0x8   : > { %p43_p0 = scmp.ne.s32.totalorder %s1969_s19, %s1965_s18  ;;  %p2816_p1 = scmp.eq.s32.totalorder %s2045_s22, 0 }
   0x9   : > { %p157_p3 = scmp.eq.s32.totalorder %s1471_s23, 1  ;;  %p1472_p5 = scmp.ge.s32.totalorder %s1977_s21, 1 }
   0xa   : > { %p2054_p4 = por %p2816_p1, %p43_p0  ;;  %p164_p7 = scmp.lt.s32.totalorder %s1977_s21, 3 }
   0xb   : > { %p2059_p6 = por %p157_p3, %p43_p0  ;;  %s1979_s27 = smov [#allocation5]  }
   0xc   : > { %s2821_s24 = scalar_select %p2054_p4, 1, 0 }
   0xd   : > { %s2822_s25 = scalar_select %p2059_p6, 1, 0 }
   0xe   : > { %p2064_p8 = pnand %p1472_p5, %p164_p7  ;;  %s176_s28 = sshll.u32 %s1979_s27, 4  ;;  %s2068_s28 = int_to_ptr.vmem [resolvable:$true] %s176_s28 }
   0xf   : > { %s1980_s30 = smov [#allocation7]   ;;  %s1789_s9 = scalar_lea.hbm %s2811_s1, 3840 }
  0x10   : > { %s2823_s26 = scalar_select %p2064_p8, 1, 0 }
  0x11   : > { %p1653_p9 = pneg %p2064_p8  ;;  %s189_s6 = sshll.u32 %s1980_s30, 4  ;;  %s2079_s6 = int_to_ptr.vmem [resolvable:$true] %s189_s6 }
  0x12   : > { %p1790_p12 = scmp.ne.s32.totalorder %s2811_s1, %s1789_s9  ;;  %p1796_p5 = scmp.lt.u32.totalorder %s1789_s9, %s2811_s1 }
  0x13   : > { %p2075_p11 = pnand %p1653_p9, %p2816_p1 }
  0x15   : > { %p2089_p13 = pneg %p2075_p11 }
  0x17   : > { %p1792_p0 = pnand %p2089_p13, %p1790_p12 }
  0x19   : > { %p1793_p3 = pneg %p1792_p0 }
  0x1b   : > { %p1798_p7 = pnand %p1796_p5, %p1793_p3 }
  0x1d   : > { %1801 = shalt.err (!%p1798_p7)
}
  0x1e   : > { %s1802_s15 = scalar_lea.vmem %s2068_s28, 3840  ;;  %p1810_p2 = scmp.lt.s32.totalorder %s2068_s28, %s2068_s28 }
  0x1f   : > { %p1803_p9 = scmp.ne.s32.totalorder %s2068_s28, %s1802_s15  ;;  %p1811_p6 = scmp.lt.s32.totalorder %s1802_s15, %s1802_s15 }
  0x21   : > { %p1805_p10 = pnand %p1803_p9, %p2089_p13  ;;  %p1812_p12 = por %p1811_p6, %p1810_p2 }
  0x23   : > { %p1806_p1 = pneg %p1805_p10 }
  0x25   : > { %p1813_p0 = pnand %p1812_p12, %p1806_p1 }
  0x27   : > { %1816 = shalt.err (!%p1813_p0)
}
  0x28   : > { %s2817_s16 = smov 128   ;;  %s2818_s17 = smov 8  }
  0x29   : > { %1656 = dma.hbm_to_vmem [thread:$0]  (!%p2075_p11), %s2811_s1, 3840, %s2068_s28, [#allocation6], %s2817_s16, %s2817_s16, %s2818_s17  }
  0x2a   : > { %s1817_s8 = scalar_lea.hbm %s2812_s2, 512 }
  0x2b   : > { %p1818_p1 = scmp.ne.s32.totalorder %s2812_s2, %s1817_s8  ;;  %p1824_p10 = scmp.lt.u32.totalorder %s1817_s8, %s2812_s2 }
  0x2d   : > { %p1820_p2 = pnand %p1818_p1, %p2089_p13 }
  0x2f   : > { %p1821_p6 = pneg %p1820_p2 }
  0x31   : > { %p1826_p3 = pnand %p1824_p10, %p1821_p6 }
  0x33   : > { %1829 = shalt.err (!%p1826_p3)
}
  0x34   : > { %s1830_s28 = scalar_lea.vmem %s2079_s6, 512  ;;  %p1838_p12 = scmp.lt.s32.totalorder %s2079_s6, %s2079_s6 }
  0x35   : > { %p1831_p5 = scmp.ne.s32.totalorder %s2079_s6, %s1830_s28  ;;  %p1839_p0 = scmp.lt.s32.totalorder %s1830_s28, %s1830_s28 }
  0x37   : > { %p1833_p7 = pnand %p1831_p5, %p2089_p13  ;;  %p1840_p1 = por %p1839_p0, %p1838_p12 }
  0x39   : > { %p1834_p9 = pneg %p1833_p7 }
  0x3b   : > { %p1841_p2 = pnand %p1840_p1, %p1834_p9 }
  0x3d   : > { %1844 = shalt.err (!%p1841_p2)
}
  0x3e   : > { %s1983_s14 = smov 256   ;;  %s1984_s15 = smov 16  }
  0x3f   : > { %1659 = dma.hbm_to_vmem [thread:$0]  (!%p2075_p11), %s2812_s2, 512, %s2079_s6, [#allocation6], %s1983_s14, %s1983_s14, %s1984_s15  }
  0x40   : > { %s1985_s30 = smov [#allocation8]   ;;  %s2137_s8 = sadd.s32 1, %s1977_s21  }
  0x41   : > { %s202_s7 = sshll.u32 %s1985_s30, 4  ;;  %s1845_s11 = scalar_lea.hbm %s2813_s3, 4096  ;;  %s203_s7 = int_to_ptr.vmem [resolvable:$true] %s202_s7 }
  0x42   : > { %p1846_p6 = scmp.ne.s32.totalorder %s2813_s3, %s1845_s11  ;;  %p1852_p5 = scmp.lt.u32.totalorder %s1845_s11, %s2813_s3 }
  0x44   : > { %p1848_p10 = pnand %p1846_p6, %p2089_p13 }
  0x46   : > { %p1849_p3 = pneg %p1848_p10 }
  0x48   : > { %p1854_p7 = pnand %p1852_p5, %p1849_p3 }
  0x4a   : > { %1857 = shalt.err (!%p1854_p7)
}
  0x4b   : > { %s1858_s6 = scalar_lea.vmem %s203_s7, 4096  ;;  %p1866_p1 = scmp.lt.s32.totalorder %s203_s7, %s203_s7 }
  0x4c   : > { %p1859_p9 = scmp.ne.s32.totalorder %s203_s7, %s1858_s6  ;;  %p1867_p2 = scmp.lt.s32.totalorder %s1858_s6, %s1858_s6 }
  0x4e   : > { %p1861_p12 = pnand %p1859_p9, %p2089_p13  ;;  %p1868_p4 = por %p1867_p2, %p1866_p1 }
  0x50   : > { %p1862_p0 = pneg %p1861_p12 }
  0x52   : > { %p1869_p8 = pnand %p1868_p4, %p1862_p0 }
  0x54   : > { %1872 = shalt.err (!%p1869_p8)
}
  0x55   : > { %s2826_s14 = smov 8   ;;  %s2827_s15 = smov 128  }
  0x56   : > { %1662 = dma.hbm_to_vmem [thread:$0]  (!%p2075_p11), %s2813_s3, 4096, %s203_s7, [#allocation9], %s2827_s15, %s2827_s15, %s2826_s14  }
  0x57   : > { %s27_s12 = ssub.s32 %s1977_s21, %s2137_s8  ;;  %s30_s29 = sadd.s32 1, %s1973_s20 }
  0x58   : > { %p28_p4 = scmp.eq.s32.totalorder %s27_s12, 0  ;;  %p37_p8 = scmp.ne.s32.totalorder %s1973_s20, %s1969_s19 }
  0x59   : > { %p38_p13 = scmp.eq.s32.totalorder %s1977_s21, 0  ;;  %p1674_p6 = scmp.lt.s32.totalorder %s1977_s21, 2 }
  0x5a   : > { %s2168_s23 = scalar_select %p28_p4, %s1973_s20, %s30_s29  }
  0x5b   : > { %p39_p10 = por %p38_p13, %p37_p8  ;;  %p2828_p3 = scmp.eq.s32.totalorder %s2045_s22, 1 }
  0x5c   : > { %s219_s30 = sand.u32 1, %s1973_s20   ;;  %s1539_s9 = sshll.u32 %s1977_s21, 10 }
  0x5d   : > { %p2172_p5 = por %p2828_p3, %p37_p8  ;;  %s1477_s10 = sshll.u32 %s219_s30, 6 }
  0x5e   : > { %s2181_s7 = scalar_lea.hbm %s2810_s0, %s1539_s9  ;;  %s223_s28 = scalar_lea.vmem [#allocation2], %s1477_s10 }
  0x5f   : > { %s231_s6 = sshll.u32 %s223_s28, 4  ;;  %p2183_p11 = pnand %p1674_p6, %p39_p10  ;;  %s2187_s6 = int_to_ptr.vmem [resolvable:$true] %s231_s6 }
  0x60   : > { %s2189_s15 = scalar_lea.sflag [#allocation3], %s219_s30  ;;  %s1873_s16 = scalar_lea.hbm %s2181_s7, 1024 }
  0x61   : > { %p1874_p7 = scmp.ne.s32.totalorder %s2181_s7, %s1873_s16  ;;  %p1875_p9 = pneg %p2183_p11 }
  0x62   : > { %s1878_s29 = scalar_lea.hbm %s2810_s0, 2048  ;;  %p1879_p1 = scmp.lt.u32.totalorder %s2181_s7, %s2810_s0 }
  0x63   : > { %p1876_p12 = pnand %p1875_p9, %p1874_p7  ;;  %p1880_p2 = scmp.lt.u32.totalorder %s1878_s29, %s1873_s16 }
  0x64   : > { %p1882_p8 = scmp.lt.u32.totalorder %s1873_s16, %s2181_s7 }
  0x65   : > { %p1877_p0 = pneg %p1876_p12  ;;  %p1881_p4 = por %p1880_p2, %p1879_p1 }
  0x67   : > { %p1883_p13 = por %p1882_p8, %p1881_p4 }
  0x69   : > { %p1884_p6 = pnand %p1883_p13, %p1877_p0 }
  0x6b   : > { %1887 = shalt.err (!%p1884_p6)
}
  0x6c   : > { %s1888_s30 = scalar_lea.vmem %s2187_s6, 1024  ;;  %s1986_s11 = smov [#allocation2]  }
  0x6d   : > { %p1889_p10 = scmp.ne.s32.totalorder %s2187_s6, %s1888_s30  ;;  %s1893_s13 = sshll.u32 %s1986_s11, 4  ;;  %s1894_s13 = int_to_ptr.vmem [resolvable:$false] %s1893_s13 }
  0x6e   : > { %s1895_s28 = scalar_lea.vmem %s1894_s13, 2048  ;;  %p1896_p12 = scmp.lt.s32.totalorder %s2187_s6, %s1894_s13 }
  0x6f   : > { %p1891_p3 = pnand %p1889_p10, %p1875_p9  ;;  %p1897_p1 = scmp.lt.s32.totalorder %s1895_s28, %s1888_s30 }
  0x71   : > { %p1892_p7 = pneg %p1891_p3  ;;  %p1898_p2 = por %p1897_p1, %p1896_p12 }
  0x73   : > { %p1899_p4 = pnand %p1898_p2, %p1892_p7 }
  0x75   : > { %1902 = shalt.err (!%p1899_p4)
}
  0x76   : > { %s1987_s16 = smov 64   ;;  %s1988_s17 = smov 4  }
  0x77   : > { %1666 = dma.hbm_to_vmem [thread:$0]  (!%p2183_p11), %s2181_s7, 1024, %s2187_s6, %s2189_s15, %s1987_s16, %s1987_s16, %s1988_s17  }
  0x78   : > { %p2831_p9 = scmp.ne.s32.totalorder %s2823_s26, 0 }
  0x79   : > { %s2220_s12 = sand.u32 (!%p2831_p9), 1, %s1969_s19   ;;  %p2832_p0 = scmp.ne.s32.totalorder (!%p2831_p9), %s2821_s24, 0 }
  0x7a   : > { %243 = sbr.rel (%p2831_p9) target bundleno = 1106 (0x452), region = 40  ;;  %s1482_s29 = sshll.u32 (!%p2831_p9), %s2220_s12, 6 }
  0x7b   : > { %s246_s9 = scalar_lea.sflag (!%p2831_p9), [#allocation3], %s2220_s12  ;;  %s2224_s10 = scalar_lea.vmem (!%p2831_p9), [#allocation2], %s1482_s29 }
  0x81   : > { %1948 = dma.done.wait (%p2832_p0), %s246_s9, 1024  }
  0x82   : > { %1950 = vsyncadd (%p2832_p0), %s246_s9, 4294966272  ;;  %p2833_p11 = scmp.eq.s32.totalorder %s2045_s22, 0 }
  0x84   : > { %1952 = dma.done.wait (%p2833_p11), [#allocation6], 4352   ;;  %p2834_p8 = pmov %p2833_p11 }
  0x86   : > { %1954 = vsyncadd (%p2834_p8), [#allocation6], 4294962944  ;;  %p2835_p13 = pmov %p2834_p8 }
  0x87   : > { %p2836_p6 = pmov %p2834_p8 }
  0x88   : > { %1956 = dma.done.wait (%p2835_p13), [#allocation9], 4096  }
  0x89   : > { %1958 = vsyncadd (%p2836_p6), [#allocation9], 4294963200  ;;  %v338_v0 = vlaneseq  ;;  %v2242_v2 = vld [vmem:[%s2224_s10] sm:$0xff]   ;;  %v2245_v3 = vld [vmem:[%s2224_s10 + $0x8] sm:$0xff]   ;;  %s1989_s24 = smov 96   ;;  %s1990_s26 = smov 48  }
  0x8a   : > { %v2251_v4 = vld [vmem:[%s2224_s10 + $0x20] sm:$0xff]   ;;  %v2254_v5 = vunpack.c.l.bf16 %v2242_v2  ;;  %v307_v6 = vunpack.c.h.bf16 %v2242_v2  ;;  %v2258_v7 = vunpack.c.l.bf16 %v2245_v3  ;;  %v2261_v8 = vld [vmem:[%s2224_s10 + $0x28] sm:$0xff]   ;;  %v2267_v10 = vld [vmem:[%s2224_s10 + $0x10] sm:$0xff]   ;;  %v2276_v13 = vunpack.c.h.bf16 %v2245_v3  ;;  %s1991_s7 = smov 16   ;;  %s1992_s6 = smov 64  }
  0x8b   : > { %v2238_v1 = vshrl.u32 %v338_v0, 7  ;;  %v2264_v9 = vunpack.c.l.bf16 %v2251_v4  ;;  %v2270_v11 = vunpack.c.h.bf16 %v2251_v4  ;;  %v2273_v12 = vunpack.c.l.bf16 %v2261_v8  ;;  %v1724_v23 = vld [vmem:[#allocation5 + $0x4] ss:$8 sps:$4 sm:$0xff]   ;;  %v1726_v28 = vld [vmem:[#allocation5] ss:$8 sps:$4 sm:$0xff]   ;;  %s1486_s30 = sshll.u32 %s2220_s12, 3 }
  0x8c   : > { %v2279_v14 = vunpack.c.l.bf16 %v2267_v10  ;;  %v365_v15 = vrot.slane %v2254_v5, 2  ;;  %v366_v16 = vrot.slane %v307_v6, 2  ;;  %v367_v17 = vrot.slane %v2258_v7, 2  ;;  %905 = vmatprep.subr.bf16.mxu0 %v1724_v23  ;;  %v1727_v33 = vld [vmem:[#allocation5 + $0x14] ss:$8 sps:$4 sm:$0xff]   ;;  %1607 = vmatprep.subr.bf16.mxu1 %v1724_v23  ;;  %s1535_s11 = sshll.u32 %s2045_s22, 7 }
  0x8d   : > { %vm381_vm0 = vcmp.lt.s32.totalorder %v2238_v1, 6  ;;  %vm340_vm1 = vcmp.lt.s32.totalorder %v2238_v1, 7  ;;  %vm422_vm2 = vcmp.lt.s32.totalorder %v2238_v1, 5  ;;  %vm463_vm3 = vcmp.lt.s32.totalorder %v2238_v1, 4  ;;  %906 = vmatpush1.bf16.msra.mxu0 %v1726_v28  ;;  %v1729_v38 = vld [vmem:[#allocation5 + $0x10] ss:$8 sps:$4 sm:$0xff]   ;;  %1622 = vmatpush1.bf16.msra.mxu1 %v1726_v28  ;;  %s2766_s29 = scalar_lea.hbm %s2815_s5, %s1535_s11 }
  0x8e   : > { %v322_v18 = vrot.slane %v2254_v5, 1  ;;  %v323_v19 = vrot.slane %v307_v6, 1  ;;  %v324_v20 = vrot.slane %v2258_v7, 1  ;;  %v406_v21 = vrot.slane %v2254_v5, 3  ;;  %v1730_v39 = vld [vmem:[#allocation5 + $0x24] ss:$8 sps:$4 sm:$0xff]   ;;  %907 = vmatprep.subr.bf16.mxu0 %v1727_v33  ;;  %1608 = vmatprep.subr.bf16.mxu1 %v1727_v33 }
  0x8f   : > { %v407_v22 = vrot.slane %v307_v6, 3  ;;  %v395_v24 = vsel %vm381_vm0, %v366_v16, %v367_v17  ;;  %v396_v25 = vsel %vm381_vm0, %v365_v15, %v366_v16  ;;  %v408_v26 = vrot.slane %v2258_v7, 3  ;;  %v1732_v56 = vld [vmem:[#allocation5 + $0x20] ss:$8 sps:$4 sm:$0xff]   ;;  %v1733_v61 = vld [vmem:[#allocation5 + $0x34] ss:$8 sps:$4 sm:$0xff]  }
  0x90   : > { %v447_v27 = vrot.slane %v2254_v5, 4  ;;  %v398_v29 = vpack.c.bf16 %v395_v24, %v396_v25  ;;  %v354_v30 = vsel %vm340_vm1, %v323_v19, %v324_v20  ;;  %v355_v31 = vsel %vm340_vm1, %v322_v18, %v323_v19  ;;  %v1735_v25 = vld [vmem:[#allocation5 + $0x30] ss:$8 sps:$4 sm:$0xff]   ;;  %s287_s13 = scalar_lea.vmem [#allocation10], %s1486_s30  ;;  %s1359_s9 = scalar_lea.sflag [#allocation4], %s2220_s12 }
  0x91   : > { %v437_v32 = vsel %vm422_vm2, %v406_v21, %v407_v22  ;;  %v357_v34 = vpack.c.bf16 %v354_v30, %v355_v31  ;;  %v436_v35 = vsel %vm422_vm2, %v407_v22, %v408_v26  ;;  %v448_v36 = vrot.slane %v307_v6, 4  ;;  %908 = vmatpush1.bf16.msra.mxu0 %v1729_v38  ;;  %1623 = vmatpush1.bf16.msra.mxu1 %v1729_v38  ;;  %v2380_v31 = vld [vmem:[%s2224_s10 + $0x30] sm:$0xff]   ;;  %s1372_s28 = sshll.u32 %s287_s13, 4  ;;  %s1993_s22 = smov [#allocation10]   ;;  %s2768_s28 = int_to_ptr.vmem [resolvable:$true] %s1372_s28 }
  0x92   : > { %v449_v37 = vrot.slane %v2258_v7, 4  ;;  %560 = vrot.lane.b32.xlu0 %v398_v29, %s1989_s24  ;;  %v439_v40 = vpack.c.bf16 %v436_v35, %v437_v32  ;;  %v373_v41 = vrot.slane %v2264_v9, 2  ;;  %v374_v42 = vrot.slane %v2270_v11, 2  ;;  %909 = vmatprep.subr.bf16.mxu0 %v1730_v39  ;;  %v1736_v32 = vld [vmem:[#allocation5 + $0x44] ss:$8 sps:$4 sm:$0xff]  }
  0x93   : > { %v375_v43 = vrot.slane %v2273_v12, 2  ;;  %536 = vrot.lane.b32.xlu1 %v357_v34, %s1990_s26  ;;  %v478_v45 = vsel %vm463_vm3, %v447_v27, %v448_v36  ;;  %v414_v46 = vrot.slane %v2264_v9, 3  ;;  %v415_v47 = vrot.slane %v2270_v11, 3  ;;  %1609 = vmatprep.subr.bf16.mxu1 %v1730_v39  ;;  %v1741_v7 = vld [vmem:[#allocation5 + $0x50] ss:$8 sps:$4 sm:$0xff]  }
  0x94   : > { %v477_v44 = vsel %vm463_vm3, %v448_v36, %v449_v37  ;;  %v388_v50 = vsel %vm381_vm0, %v373_v41, %v374_v42  ;;  %v416_v51 = vrot.slane %v2273_v12, 3  ;;  %v330_v54 = vrot.slane %v2264_v9, 1 }
  0x95   : > { %v480_v48 = vpack.c.bf16 %v477_v44, %v478_v45  ;;  %v387_v49 = vsel %vm381_vm0, %v374_v42, %v375_v43  ;;  %v429_v53 = vsel %vm422_vm2, %v414_v46, %v415_v47  ;;  %v331_v55 = vrot.slane %v2270_v11, 1  ;;  %910 = vmatpush1.bf16.msra.mxu0 %v1732_v56  ;;  %1624 = vmatpush1.bf16.msra.mxu1 %v1732_v56  ;;  %v2423_v56 = vld [vmem:[%s2224_s10 + $0x18] sm:$0xff]  }
  0x96   : > { %v402_v52 = vpack.c.bf16 %v387_v49, %v388_v50  ;;  %584 = vrot.lane.b32.xlu0 %v439_v40, %s1991_s7  ;;  %v428_v57 = vsel %vm422_vm2, %v415_v47, %v416_v51  ;;  %v332_v58 = vrot.slane %v2273_v12, 1  ;;  %v455_v59 = vrot.slane %v2264_v9, 4  ;;  %911 = vmatprep.subr.bf16.mxu0 %v1733_v61 }
  0x97   : > { %v456_v60 = vrot.slane %v2270_v11, 4  ;;  %608 = vrot.lane.b32.xlu1 %v480_v48, %s1992_s6  ;;  %v443_v62 = vpack.c.bf16 %v428_v57, %v429_v53  ;;  %v347_v63 = vsel %vm340_vm1, %v330_v54, %v331_v55  ;;  %v457_v0 = vrot.slane %v2273_v12, 4  ;;  %1610 = vmatprep.subr.bf16.mxu1 %v1733_v61  ;;  %v1739_v48 = vld [vmem:[#allocation5 + $0x54] ss:$8 sps:$4 sm:$0xff]  }
  0x98   : > { %v368_v6 = vrot.slane %v2276_v13, 2  ;;  %v346_v11 = vsel %vm340_vm1, %v331_v55, %v332_v58  ;;  %v369_v19 = vrot.slane %v2279_v14, 2  ;;  %v409_v22 = vrot.slane %v2276_v13, 3 }
  0x99   : > { %v470_v16 = vsel %vm463_vm3, %v455_v59, %v456_v60  ;;  %v469_v23 = vsel %vm463_vm3, %v456_v60, %v457_v0  ;;  %v410_v24 = vrot.slane %v2279_v14, 3  ;;  %v361_v28 = vpack.c.bf16 %v346_v11, %v347_v63  ;;  %912 = vmatpush1.bf16.msra.mxu0 %v1735_v25  ;;  %1625 = vmatpush1.bf16.msra.mxu1 %v1735_v25  ;;  %v1742_v63 = vld [vmem:[#allocation5 + $0x64] ss:$8 sps:$4 sm:$0xff]  }
  0x9a   : > { %568 = vrot.lane.b32.xlu0 %v402_v52, %s1989_s24  ;;  %v394_v29 = vsel %vm381_vm0, %v367_v17, %v368_v6  ;;  %v325_v30 = vrot.slane %v2276_v13, 1  ;;  %v484_v33 = vpack.c.bf16 %v469_v23, %v470_v16  ;;  %v393_v34 = vsel %vm381_vm0, %v368_v6, %v369_v19  ;;  %913 = vmatprep.subr.bf16.mxu0 %v1736_v32 }
  0x9b   : > { %592 = vrot.lane.b32.xlu1 %v443_v62, %s1991_s7  ;;  %v435_v35 = vsel %vm422_vm2, %v408_v26, %v409_v22  ;;  %v326_v17 = vrot.slane %v2279_v14, 1  ;;  %v434_v36 = vsel %vm422_vm2, %v409_v22, %v410_v24  ;;  %v450_v38 = vrot.slane %v2276_v13, 4  ;;  %v1738_v26 = vld [vmem:[#allocation5 + $0x40] ss:$8 sps:$4 sm:$0xff]   ;;  %1611 = vmatprep.subr.bf16.mxu1 %v1736_v32 }
  0x9c   : > { %v451_v39 = vrot.slane %v2279_v14, 4  ;;  %v317_v40 = vunpack.c.h.bf16 %v2261_v8  ;;  %v2400_v42 = vunpack.c.l.bf16 %v2380_v31  ;;  %v399_v44 = vpack.c.bf16 %v393_v34, %v394_v29  ;;  %v1745_v34 = vld [vmem:[#allocation5 + $0x74] ss:$8 sps:$4 sm:$0xff]   ;;  %v1753_v14 = vld [vmem:[#allocation5 + $0x90] ss:$8 sps:$4 sm:$0xff]  }
  0x9d   : > { %v352_v45 = vsel %vm340_vm1, %v325_v30, %v326_v17  ;;  %v353_v13 = vsel %vm340_vm1, %v324_v20, %v325_v30  ;;  %v440_v49 = vpack.c.bf16 %v434_v36, %v435_v35  ;;  %v476_v53 = vsel %vm463_vm3, %v449_v37, %v450_v38  ;;  %914 = vmatpush1.bf16.msra.mxu0 %v1738_v26  ;;  %v1744_v30 = vld [vmem:[#allocation5 + $0x60] ss:$8 sps:$4 sm:$0xff]  }
  0x9e   : > { %544 = vrot.lane.b32.xlu0 %v361_v28, %s1990_s26  ;;  %v376_v47 = vrot.slane %v317_v40, 2  ;;  %v377_v50 = vrot.slane %v2400_v42, 2  ;;  %v475_v52 = vsel %vm463_vm3, %v450_v38, %v451_v39  ;;  %v417_v20 = vrot.slane %v317_v40, 3  ;;  %915 = vmatprep.subr.bf16.mxu0 %v1739_v48 }
  0x9f   : > { %616 = vrot.lane.b32.xlu1 %v484_v33, %s1992_s6  ;;  %v418_v55 = vrot.slane %v2400_v42, 3  ;;  %v358_v57 = vpack.c.bf16 %v352_v45, %v353_v13  ;;  %v333_v61 = vrot.slane %v317_v40, 1  ;;  %v2430_v62 = vunpack.c.h.bf16 %v2267_v10  ;;  %1626 = vmatpush1.bf16.msra.mxu1 %v1738_v26  ;;  %v2474_v26 = vld [vmem:[%s2224_s10 + $0x38] sm:$0xff]   ;;  %s1903_s10 = scalar_lea.vmem %s2768_s28, 128 }
  0xa0   : > { %v386_v60 = vsel %vm381_vm0, %v375_v43, %v376_v47  ;;  %v385_v37 = vsel %vm381_vm0, %v376_v47, %v377_v50  ;;  %v334_v6 = vrot.slane %v2400_v42, 1  ;;  %v458_v11 = vrot.slane %v317_v40, 4  ;;  %1612 = vmatprep.subr.bf16.mxu1 %v1739_v48  ;;  %p1904_p10 = scmp.ne.s32.totalorder %s2768_s28, %s1903_s10 }
  0xa1   : > { %v459_v16 = vrot.slane %v2400_v42, 4  ;;  %v481_v43 = vpack.c.bf16 %v475_v52, %v476_v53  ;;  %v2441_v22 = vunpack.c.l.bf16 %v2423_v56  ;;  %v426_v23 = vsel %vm422_vm2, %v417_v20, %v418_v55  ;;  %916 = vmatpush1.bf16.msra.mxu0 %v1741_v7 }
  0xa2   : > { %562 = vrot.lane.b32.xlu0 %v399_v44, %s1989_s24  ;;  %v427_v25 = vsel %vm422_vm2, %v416_v51, %v417_v20  ;;  %v403_v28 = vpack.c.bf16 %v385_v37, %v386_v60  ;;  %v345_v29 = vsel %vm340_vm1, %v332_v58, %v333_v61  ;;  %v344_v32 = vsel %vm340_vm1, %v333_v61, %v334_v6  ;;  %v1748_v60 = vld [vmem:[#allocation5 + $0x84] ss:$8 sps:$4 sm:$0xff]   ;;  %v1750_v61 = vld [vmem:[#allocation5 + $0x80] ss:$8 sps:$4 sm:$0xff]   ;;  %v1751_v37 = vld [vmem:[#allocation5 + $0x94] ss:$8 sps:$4 sm:$0xff]   ;;  %p1905_p3 = pnand %p1904_p10, %p2172_p5 }
  0xa3   : > { %586 = vrot.lane.b32.xlu1 %v440_v49, %s1991_s7  ;;  %v467_v51 = vsel %vm463_vm3, %v458_v11, %v459_v16  ;;  %v468_v58 = vsel %vm463_vm3, %v457_v0, %v458_v11  ;;  %v370_v33 = vrot.slane %v2430_v62, 2  ;;  %917 = vmatprep.subr.bf16.mxu0 %v1742_v63  ;;  %v444_v35 = vpack.c.bf16 %v426_v23, %v427_v25  ;;  %v1747_v0 = vld [vmem:[#allocation5 + $0x70] ss:$8 sps:$4 sm:$0xff]  }
  0xa4   : > { %v371_v36 = vrot.slane %v2441_v22, 2  ;;  %v411_v38 = vrot.slane %v2430_v62, 3  ;;  %v412_v40 = vrot.slane %v2441_v22, 3  ;;  %1627 = vmatpush1.bf16.msra.mxu1 %v1741_v7  ;;  %v362_v12 = vpack.c.bf16 %v344_v32, %v345_v29  ;;  %v1754_v32 = vld [vmem:[#allocation5 + $0xa4] ss:$8 sps:$4 sm:$0xff]   ;;  %p1906_p7 = pneg %p1905_p3 }
  0xa5   : > { %v485_v44 = vpack.c.bf16 %v467_v51, %v468_v58  ;;  %918 = vmatpush1.bf16.msra.mxu0 %v1744_v30  ;;  %1613 = vmatprep.subr.bf16.mxu1 %v1742_v63  ;;  %v392_v45 = vsel %vm381_vm0, %v369_v19, %v370_v33  ;;  %v327_v13 = vrot.slane %v2430_v62, 1  ;;  %v328_v47 = vrot.slane %v2441_v22, 1 }
  0xa6   : > { %538 = vrot.lane.b32.xlu0 %v358_v57, %s1990_s26  ;;  %v452_v48 = vrot.slane %v2430_v62, 4  ;;  %919 = vmatprep.subr.bf16.mxu0 %v1745_v34  ;;  %v391_v49 = vsel %vm381_vm0, %v370_v33, %v371_v36  ;;  %v453_v52 = vrot.slane %v2441_v22, 4  ;;  %v319_v53 = vunpack.c.h.bf16 %v2380_v31 }
  0xa7   : > { %610 = vrot.lane.b32.xlu1 %v481_v43, %s1992_s6  ;;  %v2492_v19 = vunpack.c.l.bf16 %v2474_v26  ;;  %v432_v20 = vsel %vm422_vm2, %v411_v38, %v412_v40  ;;  %v433_v57 = vsel %vm422_vm2, %v410_v24, %v411_v38  ;;  %v400_v62 = vpack.c.bf16 %v391_v49, %v392_v45  ;;  %v1757_v45 = vld [vmem:[#allocation5 + $0xb4] ss:$8 sps:$4 sm:$0xff]  }
  0xa8   : > { %1628 = vmatpush1.bf16.msra.mxu1 %v1744_v30  ;;  %v350_v7 = vsel %vm340_vm1, %v327_v13, %v328_v47  ;;  %v351_v63 = vsel %vm340_vm1, %v326_v17, %v327_v13  ;;  %v474_v24 = vsel %vm463_vm3, %v451_v39, %v452_v48  ;;  %v441_v11 = vpack.c.bf16 %v432_v20, %v433_v57 }
  0xa9   : > { %920 = vmatpush1.bf16.msra.mxu0 %v1747_v0  ;;  %1614 = vmatprep.subr.bf16.mxu1 %v1745_v34  ;;  %v473_v43 = vsel %vm463_vm3, %v452_v48, %v453_v52  ;;  %v378_v23 = vrot.slane %v319_v53, 2  ;;  %v379_v25 = vrot.slane %v2492_v19, 2  ;;  %v420_v17 = vrot.slane %v2492_v19, 3 }
  0xaa   : > { %570 = vrot.lane.b32.xlu0 %v403_v28, %s1989_s24  ;;  %v419_v28 = vrot.slane %v319_v53, 3  ;;  %921 = vmatprep.subr.bf16.mxu0 %v1748_v60  ;;  %v359_v39 = vpack.c.bf16 %v350_v7, %v351_v63  ;;  %v482_v29 = vpack.c.bf16 %v473_v43, %v474_v24  ;;  %v335_v30 = vrot.slane %v319_v53, 1 }
  0xab   : > { %594 = vrot.lane.b32.xlu1 %v444_v35, %s1991_s7  ;;  %v383_v51 = vsel %vm381_vm0, %v378_v23, %v379_v25  ;;  %v384_v58 = vsel %vm381_vm0, %v377_v50, %v378_v23  ;;  %v336_v33 = vrot.slane %v2492_v19, 1  ;;  %v313_v34 = vunpack.c.h.bf16 %v2423_v56  ;;  %v1756_v50 = vld [vmem:[#allocation5 + $0xa0] ss:$8 sps:$4 sm:$0xff]  }
  0xac   : > { %1629 = vmatpush1.bf16.msra.mxu1 %v1747_v0  ;;  %v424_v35 = vsel %vm422_vm2, %v419_v28, %v420_v17  ;;  %v425_v38 = vsel %vm422_vm2, %v418_v55, %v419_v28  ;;  %v404_v0 = vpack.c.bf16 %v383_v51, %v384_v58  ;;  %v343_v55 = vsel %vm340_vm1, %v334_v6, %v335_v30 }
  0xad   : > { %922 = vmatpush1.bf16.msra.mxu0 %v1750_v61  ;;  %1615 = vmatprep.subr.bf16.mxu1 %v1748_v60  ;;  %v445_v13 = vpack.c.bf16 %v424_v35, %v425_v38  ;;  %v342_v48 = vsel %vm340_vm1, %v335_v30, %v336_v33  ;;  %v372_v49 = vrot.slane %v313_v34, 2  ;;  %v413_v57 = vrot.slane %v313_v34, 3  ;;  %v1759_v60 = vld [vmem:[#allocation5 + $0xb0] ss:$8 sps:$4 sm:$0xff]  }
  0xae   : > { %546 = vrot.lane.b32.xlu0 %v362_v12, %s1990_s26  ;;  %923 = vmatprep.subr.bf16.mxu0 %v1751_v37  ;;  %v460_v12 = vrot.slane %v319_v53, 4  ;;  %v363_v6 = vpack.c.bf16 %v342_v48, %v343_v55  ;;  %v329_v63 = vrot.slane %v313_v34, 1  ;;  %vm624_vm4 = vcmask 392192  }
  0xaf   : > { %618 = vrot.lane.b32.xlu1 %v485_v44, %s1992_s6  ;;  %v461_v44 = vrot.slane %v2492_v19, 4  ;;  %v389_v42 = vsel %vm381_vm0, %v372_v49, %v373_v41  ;;  %v430_v24 = vsel %vm422_vm2, %v413_v57, %v414_v46  ;;  %v1762_v41 = vld [vmem:[#allocation5 + $0xc0] ss:$8 sps:$4 sm:$0xff]   ;;  %vm674_vm5 = vcmask 130048  }
  0xb0   : > { %1630 = vmatpush1.bf16.msra.mxu1 %v1750_v61  ;;  %v466_v20 = vsel %vm463_vm3, %v459_v16, %v460_v12  ;;  %v321_v61 = vunpack.c.h.bf16 %v2474_v26  ;;  %v390_v16 = vsel %vm381_vm0, %v371_v36, %v372_v49  ;;  %v1763_v36 = vld [vmem:[#allocation5 + $0xd4] ss:$8 sps:$4 sm:$0xff]   ;;  %v348_v46 = vsel %vm340_vm1, %v329_v63, %v330_v54  ;;  %v1766_v54 = vld [vmem:[#allocation5 + $0xd0] ss:$8 sps:$4 sm:$0xff]  }
  0xb1   : > { %924 = vmatpush1.bf16.msra.mxu0 %v1753_v14  ;;  %1616 = vmatprep.subr.bf16.mxu1 %v1751_v37  ;;  %v465_v53 = vsel %vm463_vm3, %v460_v12, %v461_v44  ;;  %v431_v37 = vsel %vm422_vm2, %v412_v40, %v413_v57  ;;  %v401_v43 = vpack.c.bf16 %v389_v42, %v390_v16  ;;  %vm691_vm6 = vcmask 523264  }
  0xb2   : > { %564 = vrot.lane.b32.xlu0 %v400_v62, %s1989_s24  ;;  %925 = vmatprep.subr.bf16.mxu0 %v1754_v32  ;;  %v1760_v62 = vld [vmem:[#allocation5 + $0xc4] ss:$8 sps:$4 sm:$0xff]   ;;  %v486_v7 = vpack.c.bf16 %v465_v53, %v466_v20  ;;  %v442_v23 = vpack.c.bf16 %v430_v24, %v431_v37  ;;  %v349_v40 = vsel %vm340_vm1, %v328_v47, %v329_v63  ;;  %v380_v28 = vrot.slane %v321_v61, 2 }
  0xb3   : > { %588 = vrot.lane.b32.xlu1 %v441_v11, %s1991_s7  ;;  %v454_v11 = vrot.slane %v313_v34, 4  ;;  %v360_v30 = vpack.c.bf16 %v348_v46, %v349_v40  ;;  %v1767_v47 = vld [vmem:[#allocation5 + $0xe4] ss:$8 sps:$4 sm:$0xff]   ;;  %v462_v58 = vrot.slane %v321_v61, 4  ;;  %vm888_vm7 = vcmask 916480  }
  0xb4   : > { %1631 = vmatpush1.bf16.msra.mxu1 %v1753_v14  ;;  %v397_v22 = vsel %vm381_vm0, %v380_v28, %v365_v15  ;;  %vm649_vm8 = vcmask 785408   ;;  %vm1253_vm9 = vcmask 1041409   ;;  %vm1255_vm10 = vcmask 1042434  }
  0xb5   : > { %926 = vmatpush1.bf16.msra.mxu0 %v1756_v50  ;;  %1617 = vmatprep.subr.bf16.mxu1 %v1754_v32  ;;  %v471_v14 = vsel %vm463_vm3, %v454_v11, %v455_v59  ;;  %v382_v59 = vsel %vm381_vm0, %v379_v25, %v380_v28  ;;  %v1769_v25 = vld [vmem:[#allocation5 + $0xe0] ss:$8 sps:$4 sm:$0xff]   ;;  %v464_v35 = vsel %vm463_vm3, %v461_v44, %v462_v58  ;;  %vm1257_vm11 = vcmask 1043459  }
  0xb6   : > { %540 = vrot.lane.b32.xlu0 %v359_v39, %s1990_s26  ;;  %927 = vmatprep.subr.bf16.mxu0 %v1757_v45  ;;  %v472_v39 = vsel %vm463_vm3, %v453_v52, %v454_v11  ;;  %v337_v52 = vrot.slane %v321_v61, 1  ;;  %v405_v34 = vpack.c.bf16 %v397_v22, %v382_v59  ;;  %v479_v38 = vsel %vm463_vm3, %v462_v58, %v447_v27 }
  0xb7   : > { %612 = vrot.lane.b32.xlu1 %v482_v29, %s1992_s6  ;;  %v421_v29 = vrot.slane %v321_v61, 3  ;;  %v483_v9 = vpack.c.bf16 %v471_v14, %v472_v39  ;;  %v487_v12 = vpack.c.bf16 %v479_v38, %v464_v35  ;;  %vm1259_vm12 = vcmask 1044484  }
  0xb8   : > { %1632 = vmatpush1.bf16.msra.mxu1 %v1756_v50  ;;  %vm1261_vm13 = vcmask 1045509   ;;  %vm1263_vm14 = vcmask 1046534   ;;  %vm1265_vm15 = vcmask 1047559  }
  0xb9   : > { %928 = vmatpush1.bf16.msra.mxu0 %v1759_v60  ;;  %1618 = vmatprep.subr.bf16.mxu1 %v1757_v45  ;;  %v423_v32 = vsel %vm422_vm2, %v420_v17, %v421_v29  ;;  %v438_v51 = vsel %vm422_vm2, %v421_v29, %v406_v21  ;;  %v341_v17 = vsel %vm340_vm1, %v336_v33, %v337_v52 }
  0xba   : > { %572 = vrot.lane.b32.xlu0 %v404_v0, %s1989_s24  ;;  %929 = vmatprep.subr.bf16.mxu0 %v1760_v62  ;;  %v446_v15 = vpack.c.bf16 %v438_v51, %v423_v32  ;;  %v356_v21 = vsel %vm340_vm1, %v337_v52, %v322_v18 }
  0xbb   : > { %596 = vrot.lane.b32.xlu1 %v445_v13, %s1991_s7  ;;  %v364_v33 = vpack.c.bf16 %v356_v21, %v341_v17 }
  0xbc   : > { %1633 = vmatpush1.bf16.msra.mxu1 %v1759_v60 }
  0xbd   : > { %930 = vmatpush1.bf16.msra.mxu0 %v1762_v41  ;;  %1619 = vmatprep.subr.bf16.mxu1 %v1760_v62 }
  0xbe   : > { %548 = vrot.lane.b32.xlu0 %v363_v6, %s1990_s26  ;;  %931 = vmatprep.subr.bf16.mxu0 %v1763_v36 }
  0xbf   : > { %620 = vrot.lane.b32.xlu1 %v486_v7, %s1992_s6 }
  0xc0   : > { %1634 = vmatpush1.bf16.msra.mxu1 %v1762_v41 }
  0xc1   : > { %932 = vmatpush1.bf16.msra.mxu0 %v1766_v54  ;;  %1620 = vmatprep.subr.bf16.mxu1 %v1763_v36 }
  0xc2   : > { %566 = vrot.lane.b32.xlu0 %v401_v43, %s1989_s24  ;;  %933 = vmatprep.subr.bf16.mxu0 %v1767_v47 }
  0xc3   : > { %590 = vrot.lane.b32.xlu1 %v442_v23, %s1991_s7 }
  0xc4   : > { %1635 = vmatpush1.bf16.msra.mxu1 %v1766_v54 }
  0xc5   : > { %934 = vmatpush1.bf16.msra.mxu0 %v1769_v25  ;;  %1621 = vmatprep.subr.bf16.mxu1 %v1767_v47 }
  0xc6   : > { %542 = vrot.lane.b32.xlu0 %v360_v30, %s1990_s26 }
  0xc7   : > { %614 = vrot.lane.b32.xlu1 %v483_v9, %s1992_s6 }
  0xc8   : > { %1636 = vmatpush1.bf16.msra.mxu1 %v1769_v25 }
  0xca   : > { %574 = vrot.lane.b32.xlu0 %v405_v34, %s1989_s24  ;;  %s1907_s24 = sshll.u32 %s1993_s22, 4  ;;  %s1908_s24 = int_to_ptr.vmem [resolvable:$false] %s1907_s24 }
  0xcb   : > { %598 = vrot.lane.b32.xlu1 %v446_v15, %s1991_s7  ;;  %p1910_p12 = scmp.lt.s32.totalorder %s2768_s28, %s1908_s24 }
  0xce   : > { %550 = vrot.lane.b32.xlu0 %v364_v33, %s1990_s26  ;;  %s1909_s26 = scalar_lea.vmem %s1908_s24, 256 }
  0xcf   : > { %622 = vrot.lane.b32.xlu1 %v487_v12, %s1992_s6  ;;  %p1911_p1 = scmp.lt.s32.totalorder %s1909_s26, %s1903_s10 }
  0xd1   : > { %p1912_p2 = por %p1911_p1, %p1910_p12 }
  0xd3   : > { %p1913_p4 = pnand %p1912_p2, %p1906_p7 }
 0x104   : > { %v561_v18 = vpop.permute.xlu0 %560 }
 0x105   : > { %v537_v5 = vpop.permute.xlu1 %536 }
 0x106   : > { %v627_v1 = vsel %vm624_vm4, %v2242_v2, %v537_v5  ;;  %v1214_v5 = vld [vmem:[#allocation8 + $0x80] sm:$0xff] }
 0x107   : > { %v651_v0 = vsel %vm649_vm8, %v627_v1, %v561_v18  ;;  %v1215_v1 = vld [vmem:[#allocation8 + $0x88] sm:$0xff] }
 0x108   : > { %v585_v27 = vpop.permute.xlu0 %584 }
 0x109   : > { %v676_v19 = vsel %vm674_vm5, %v561_v18, %v585_v27  ;;  %v609_v44 = vpop.permute.xlu1 %608  ;;  %v1575_v27 = vpack.c.bf16 %v1215_v1, %v1214_v5 }
 0x10a   : > { %v693_v50 = vsel %vm691_vm6, %v676_v19, %v609_v44  ;;  %v1198_v19 = vld [vmem:[#allocation8] sm:$0xff]  ;;  %v1199_v44 = vld [vmem:[#allocation8 + $0x8] sm:$0xff] }
 0x10b   : > { %1525 = vmatprep.mubr.msk.bf16.mxu0 %vm888_vm7, %v693_v50  ;;  %v1577_v50 = vpack.c.bf16 %v1199_v44, %v1198_v19  ;;  %1576 = vmatprep.subr.bf16.mxu1 %v1575_v27 }
 0x10c   : > { %v569_v45 = vpop.permute.xlu0 %568  ;;  %938 = vmatmul.mubr.bf16.vlgmr.msra.gmra.mrb[0].mxu0 %v651_v0  ;;  %v1216_v0 = vld [vmem:[#allocation8 + $0x90] sm:$0xff] }
 0x10d   : > { %v593_v13 = vpop.permute.xlu1 %592 }
 0x10e   : > { %v684_v55 = vsel %vm674_vm5, %v569_v45, %v593_v13 }
 0x110   : > { %v545_v48 = vpop.permute.xlu0 %544 }
 0x111   : > { %v639_v2 = vsel %vm624_vm4, %v2251_v4, %v545_v48  ;;  %v617_v49 = vpop.permute.xlu1 %616  ;;  %v1201_v48 = vld [vmem:[#allocation8 + $0x18] sm:$0xff] }
 0x112   : > { %v701_v53 = vsel %vm691_vm6, %v684_v55, %v617_v49  ;;  %v663_v20 = vsel %vm649_vm8, %v639_v2, %v569_v45  ;;  %v1217_v45 = vld [vmem:[#allocation8 + $0x98] sm:$0xff]  ;;  %v1218_v2 = vld [vmem:[#allocation8 + $0xa0] sm:$0xff]  ;;  %v1219_v49 = vld [vmem:[#allocation8 + $0xa8] sm:$0xff] }
 0x113   : > { %1529 = vmatprep.mubr.msk.bf16.mxu1 %vm888_vm7, %v701_v53  ;;  %v1579_v13 = vpack.c.bf16 %v1217_v45, %v1216_v0  ;;  %v1583_v53 = vpack.c.bf16 %v1219_v49, %v1218_v2 }
 0x114   : > { %978 = vmatmul.mubr.bf16.vlgmr.msra.gmra.mrb[0].mxu1 %v663_v20  ;;  %v563_v57 = vpop.permute.xlu0 %562  ;;  %v1202_v20 = vld [vmem:[#allocation8 + $0x20] sm:$0xff] }
 0x115   : > { %v587_v60 = vpop.permute.xlu1 %586  ;;  %1578 = vmatpush3.bf16.msra.mxu1 %v1577_v50 }
 0x116   : > { %v678_v61 = vsel %vm674_vm5, %v563_v57, %v587_v60  ;;  %1580 = vmatprep.subr.bf16.mxu1 %v1579_v13 }
 0x118   : > { %v539_v6 = vpop.permute.xlu0 %538 }
 0x119   : > { %v630_v62 = vsel %vm624_vm4, %v2245_v3, %v539_v6  ;;  %v611_v7 = vpop.permute.xlu1 %610  ;;  %v1220_v6 = vld [vmem:[#allocation8 + $0xb0] sm:$0xff] }
 0x11a   : > { %v695_v42 = vsel %vm691_vm6, %v678_v61, %v611_v7  ;;  %v654_v4 = vsel %vm649_vm8, %v630_v62, %v563_v57  ;;  %v1203_v57 = vld [vmem:[#allocation8 + $0x28] sm:$0xff]  ;;  %v1221_v61 = vld [vmem:[#allocation8 + $0xb8] sm:$0xff]  ;;  %v1204_v7 = vld [vmem:[#allocation8 + $0x30] sm:$0xff] }
 0x11b   : > { %1526 = vmatprep.mubr.msk.bf16.mxu0 %vm888_vm7, %v695_v42  ;;  %v1585_v60 = vpack.c.bf16 %v1203_v57, %v1202_v20  ;;  %v1587_v62 = vpack.c.bf16 %v1221_v61, %v1220_v6  ;;  %v1205_v42 = vld [vmem:[#allocation8 + $0x38] sm:$0xff] }
 0x11c   : > { %948 = vmatmul.mubr.bf16.gmra.mrb[4].mxu0 %v654_v4  ;;  %v571_v16 = vpop.permute.xlu0 %570  ;;  %v1589_v4 = vpack.c.bf16 %v1205_v42, %v1204_v7 }
 0x11d   : > { %v595_v63 = vpop.permute.xlu1 %594 }
 0x11e   : > { %v686_v37 = vsel %vm674_vm5, %v571_v16, %v595_v63  ;;  %v1223_v63 = vld [vmem:[#allocation8 + $0xc8] sm:$0xff] }
 0x120   : > { %v547_v24 = vpop.permute.xlu0 %546 }
 0x121   : > { %v642_v11 = vsel %vm624_vm4, %v2261_v8, %v547_v24  ;;  %v619_v41 = vpop.permute.xlu1 %618 }
 0x122   : > { %v703_v43 = vsel %vm691_vm6, %v686_v37, %v619_v41  ;;  %v666_v3 = vsel %vm649_vm8, %v642_v11, %v571_v16  ;;  %v1222_v16 = vld [vmem:[#allocation8 + $0xc0] sm:$0xff]  ;;  %v1207_v11 = vld [vmem:[#allocation8 + $0x48] sm:$0xff] }
 0x123   : > { %1530 = vmatprep.mubr.msk.bf16.mxu1 %vm888_vm7, %v703_v43  ;;  %v1591_v24 = vpack.c.bf16 %v1223_v63, %v1222_v16  ;;  %v1206_v37 = vld [vmem:[#allocation8 + $0x40] sm:$0xff]  ;;  %v1224_v43 = vld [vmem:[#allocation8 + $0xd0] sm:$0xff] }
 0x124   : > { %988 = vmatmul.mubr.bf16.gmra.mrb[4].mxu1 %v666_v3  ;;  %v565_v36 = vpop.permute.xlu0 %564  ;;  %v1593_v41 = vpack.c.bf16 %v1207_v11, %v1206_v37  ;;  %v1225_v3 = vld [vmem:[#allocation8 + $0xd8] sm:$0xff] }
 0x125   : > { %v589_v23 = vpop.permute.xlu1 %588 }
 0x126   : > { %v680_v40 = vsel %vm674_vm5, %v565_v36, %v589_v23  ;;  %v1208_v23 = vld [vmem:[#allocation8 + $0x50] sm:$0xff] }
 0x128   : > { %v541_v46 = vpop.permute.xlu0 %540 }
 0x129   : > { %v633_v28 = vsel %vm624_vm4, %v2267_v10, %v541_v46  ;;  %v613_v14 = vpop.permute.xlu1 %612  ;;  %v1209_v46 = vld [vmem:[#allocation8 + $0x58] sm:$0xff] }
 0x12a   : > { %v697_v39 = vsel %vm691_vm6, %v680_v40, %v613_v14  ;;  %v657_v8 = vsel %vm649_vm8, %v633_v28, %v565_v36  ;;  %v1595_v36 = vpack.c.bf16 %v1225_v3, %v1224_v43  ;;  %v1597_v40 = vpack.c.bf16 %v1209_v46, %v1208_v23  ;;  %v1226_v28 = vld [vmem:[#allocation8 + $0xe0] sm:$0xff]  ;;  %v1227_v14 = vld [vmem:[#allocation8 + $0xe8] sm:$0xff] }
 0x12b   : > { %1527 = vmatprep.mubr.msk.bf16.mxu0 %vm888_vm7, %v697_v39  ;;  %v1599_v39 = vpack.c.bf16 %v1227_v14, %v1226_v28 }
 0x12c   : > { %958 = vmatmul.mubr.bf16.gmra.mrb[8].mxu0 %v657_v8  ;;  %v573_v29 = vpop.permute.xlu0 %572  ;;  %v1210_v8 = vld [vmem:[#allocation8 + $0x60] sm:$0xff] }
 0x12d   : > { %v597_v54 = vpop.permute.xlu1 %596 }
 0x12e   : > { %v688_v47 = vsel %vm674_vm5, %v573_v29, %v597_v54 }
 0x130   : > { %v549_v30 = vpop.permute.xlu0 %548 }
 0x131   : > { %v645_v9 = vsel %vm624_vm4, %v2380_v31, %v549_v30  ;;  %v621_v59 = vpop.permute.xlu1 %620  ;;  %v1228_v30 = vld [vmem:[#allocation8 + $0xf0] sm:$0xff] }
 0x132   : > { %v705_v22 = vsel %vm691_vm6, %v688_v47, %v621_v59  ;;  %v669_v10 = vsel %vm649_vm8, %v645_v9, %v573_v29  ;;  %v1211_v29 = vld [vmem:[#allocation8 + $0x68] sm:$0xff]  ;;  %v1229_v47 = vld [vmem:[#allocation8 + $0xf8] sm:$0xff]  ;;  %v1212_v59 = vld [vmem:[#allocation8 + $0x70] sm:$0xff] }
 0x133   : > { %1531 = vmatprep.mubr.msk.bf16.mxu1 %vm888_vm7, %v705_v22  ;;  %v1601_v54 = vpack.c.bf16 %v1211_v29, %v1210_v8  ;;  %v1603_v9 = vpack.c.bf16 %v1229_v47, %v1228_v30  ;;  %v1213_v22 = vld [vmem:[#allocation8 + $0x78] sm:$0xff] }
 0x134   : > { %998 = vmatmul.mubr.bf16.gmra.mrb[8].mxu1 %v669_v10  ;;  %v567_v52 = vpop.permute.xlu0 %566  ;;  %v1605_v10 = vpack.c.bf16 %v1213_v22, %v1212_v59 }
 0x135   : > { %v591_v32 = vpop.permute.xlu1 %590 }
 0x136   : > { %v682_v58 = vsel %vm674_vm5, %v567_v52, %v591_v32  ;;  %v2688_v32 = vld [vmem:[#allocation7 + $0x8] sm:$0xff] }
 0x138   : > { %v543_v51 = vpop.permute.xlu0 %542 }
 0x139   : > { %v636_v25 = vsel %vm624_vm4, %v2423_v56, %v543_v51  ;;  %v615_v34 = vpop.permute.xlu1 %614 }
 0x13a   : > { %v699_v15 = vsel %vm691_vm6, %v682_v58, %v615_v34  ;;  %v660_v31 = vsel %vm649_vm8, %v636_v25, %v567_v52  ;;  %v2686_v52 = vld [vmem:[#allocation7] sm:$0xff]  ;;  %v2690_v58 = vld [vmem:[#allocation7 + $0x10] sm:$0xff] }
 0x13b   : > { %1528 = vmatprep.mubr.msk.bf16.mxu0 %vm888_vm7, %v699_v15  ;;  %v2693_v15 = vld [vmem:[#allocation7 + $0x18] sm:$0xff] }
 0x13c   : > { %968 = vmatmul.mubr.bf16.gmra.mrb[12].mxu0 %v660_v31  ;;  %v575_v17 = vpop.permute.xlu0 %574 }
 0x13d   : > { %v599_v21 = vpop.permute.xlu1 %598 }
 0x13e   : > { %v690_v38 = vsel %vm674_vm5, %v575_v17, %v599_v21 }
 0x140   : > { %v551_v35 = vpop.permute.xlu0 %550 }
 0x141   : > { %v648_v33 = vsel %vm624_vm4, %v2474_v26, %v551_v35  ;;  %v623_v12 = vpop.permute.xlu1 %622  ;;  %v1200_v26 = vld [vmem:[#allocation8 + $0x10] sm:$0xff] }
 0x142   : > { %v707_v18 = vsel %vm691_vm6, %v690_v38, %v623_v12  ;;  %v672_v56 = vsel %vm649_vm8, %v648_v33, %v575_v17  ;;  %v1581_v55 = vpack.c.bf16 %v1201_v48, %v1200_v26 }
 0x143   : > { %1532 = vmatprep.mubr.msk.bf16.mxu1 %vm888_vm7, %v707_v18 }
 0x144   : > { %1008 = vmatmul.mubr.bf16.gmra.mrb[12].mxu1 %v672_v56 }
 0x145   : > { %1582 = vmatpush3.bf16.msra.mxu1 %v1581_v55 }
 0x146   : > { %1584 = vmatprep.subr.bf16.mxu1 %v1583_v53 }
 0x149   : > { %1586 = vmatpush3.bf16.msra.mxu1 %v1585_v60 }
 0x14a   : > { %1588 = vmatprep.subr.bf16.mxu1 %v1587_v62 }
 0x14d   : > { %1590 = vmatpush3.bf16.msra.mxu1 %v1589_v4 }
 0x14e   : > { %1592 = vmatprep.subr.bf16.mxu1 %v1591_v24 }
 0x151   : > { %1594 = vmatpush3.bf16.msra.mxu1 %v1593_v41 }
 0x152   : > { %1596 = vmatprep.subr.bf16.mxu1 %v1595_v36 }
 0x155   : > { %1598 = vmatpush3.bf16.msra.mxu1 %v1597_v40 }
 0x156   : > { %1600 = vmatprep.subr.bf16.mxu1 %v1599_v39 }
 0x159   : > { %1602 = vmatpush3.bf16.msra.mxu1 %v1601_v54 }
 0x15a   : > { %1604 = vmatprep.subr.bf16.mxu1 %v1603_v9 }
 0x15d   : > { %1606 = vmatpush3.bf16.msra.mxu1 %v1605_v10 }
 0x1df   : > { %v939_v51 = vpop.f32.mrb[0].mxu0 }
 0x1e0   : > { %v1022_v25 = vadd.f32 %v2686_v52, %v939_v51  ;;  %v941_v34 = vpop.f32.mrb[1].mxu0 }
 0x1e1   : > { %v1023_v31 = vadd.f32 %v2688_v32, %v941_v34  ;;  %v943_v17 = vpop.f32.mrb[2].mxu0 }
 0x1e2   : > { %v1024_v21 = vadd.f32 %v2690_v58, %v943_v17  ;;  %v945_v35 = vpop.f32.mrb[3].mxu0  ;;  %v1054_v33 = vmax.f32 %v1022_v25, 0.0 }
 0x1e3   : > { %v1025_v38 = vadd.f32 %v2693_v15, %v945_v35  ;;  %v1055_v18 = vmax.f32 %v1023_v31, 0.0 }
 0x1e4   : > { %v1056_v12 = vmax.f32 %v1024_v21, 0.0 }
 0x1e5   : > { %v1057_v56 = vmax.f32 %v1025_v38, 0.0 }
 0x1e6   : > { %v1086_v5 = vmax.f32 %v1054_v33, %v1056_v12 }
 0x1e7   : > { %v1093_v1 = vmax.f32 %v1055_v18, %v1057_v56  ;;  %v979_v27 = vpop.f32.mrb[0].mxu1 }
 0x1e8   : > { %v1038_v19 = vadd.f32 %v2686_v52, %v979_v27  ;;  %v981_v44 = vpop.f32.mrb[1].mxu1  ;;  %v1087_v53 = vrot.slane %v1086_v5, 4 }
 0x1e9   : > { %v1039_v50 = vadd.f32 %v2688_v32, %v981_v44  ;;  %v983_v0 = vpop.f32.mrb[2].mxu1  ;;  %v1094_v57 = vrot.slane %v1093_v1, 4 }
 0x1ea   : > { %v1040_v45 = vadd.f32 %v2690_v58, %v983_v0  ;;  %v985_v13 = vpop.f32.mrb[3].mxu1  ;;  %v1070_v48 = vmax.f32 %v1038_v19, 0.0  ;;  %v1088_v4 = vmax.f32 %v1086_v5, %v1087_v53 }
 0x1eb   : > { %v1041_v26 = vadd.f32 %v2693_v15, %v985_v13  ;;  %v1071_v2 = vmax.f32 %v1039_v50, 0.0  ;;  %v1095_v24 = vmax.f32 %v1093_v1, %v1094_v57 }
 0x1ec   : > { %v1072_v55 = vmax.f32 %v1040_v45, 0.0  ;;  %v1089_v36 = vrot.slane %v1088_v4, 2 }
 0x1ed   : > { %v1073_v49 = vmax.f32 %v1041_v26, 0.0  ;;  %v1096_v46 = vrot.slane %v1095_v24, 2 }
 0x1ee   : > { %v2702_v20 = vmax.f32 %v1070_v48, %v1072_v55  ;;  %v1090_v47 = vmax.f32 %v1088_v4, %v1089_v36 }
 0x1ef   : > { %v2704_v60 = vmax.f32 %v1071_v2, %v1073_v49  ;;  %v949_v6 = vpop.f32.mrb[4].mxu0  ;;  %v1097_v10 = vmax.f32 %v1095_v24, %v1096_v46 }
 0x1f0   : > { %v1026_v61 = vadd.f32 %v2686_v52, %v949_v6  ;;  %v951_v62 = vpop.f32.mrb[5].mxu0  ;;  %v1091_v33 = vrot.slane %v1090_v47, 1 }
 0x1f1   : > { %v1027_v7 = vadd.f32 %v2688_v32, %v951_v62  ;;  %v953_v42 = vpop.f32.mrb[6].mxu0  ;;  %v1098_v56 = vrot.slane %v1097_v10, 1 }
 0x1f2   : > { %v1028_v16 = vadd.f32 %v2690_v58, %v953_v42  ;;  %v955_v63 = vpop.f32.mrb[7].mxu0  ;;  %v1058_v11 = vmax.f32 %v1026_v61, 0.0  ;;  %v1092_v26 = vmax.f32 %v1090_v47, %v1091_v33 }
 0x1f3   : > { %v1029_v37 = vadd.f32 %v2693_v15, %v955_v63  ;;  %v1059_v43 = vmax.f32 %v1027_v7, 0.0  ;;  %v1099_v49 = vmax.f32 %v1097_v10, %v1098_v56  ;;  %v1150_v10 = vrot.slane %v2704_v60, 4 }
 0x1f4   : > { %v1060_v41 = vmax.f32 %v1028_v16, 0.0 }
 0x1f5   : > { %v1061_v3 = vmax.f32 %v1029_v37, 0.0 }
 0x1f6   : > { %v1100_v23 = vmax.f32 %v1058_v11, %v1060_v41 }
 0x1f7   : > { %v1107_v40 = vmax.f32 %v1059_v43, %v1061_v3  ;;  %v989_v28 = vpop.f32.mrb[4].mxu1 }
 0x1f8   : > { %v1101_v14 = vrot.slane %v1100_v23, 4  ;;  %v1042_v39 = vadd.f32 %v2686_v52, %v989_v28  ;;  %v991_v8 = vpop.f32.mrb[5].mxu1 }
 0x1f9   : > { %v1108_v29 = vrot.slane %v1107_v40, 4  ;;  %v1043_v54 = vadd.f32 %v2688_v32, %v991_v8  ;;  %v993_v30 = vpop.f32.mrb[6].mxu1 }
 0x1fa   : > { %v1102_v9 = vmax.f32 %v1100_v23, %v1101_v14  ;;  %v1044_v59 = vadd.f32 %v2690_v58, %v993_v30  ;;  %v995_v22 = vpop.f32.mrb[7].mxu1  ;;  %v1074_v31 = vmax.f32 %v1042_v39, 0.0 }
 0x1fb   : > { %v1109_v51 = vmax.f32 %v1107_v40, %v1108_v29  ;;  %v1045_v25 = vadd.f32 %v2693_v15, %v995_v22  ;;  %v1075_v35 = vmax.f32 %v1043_v54, 0.0 }
 0x1fc   : > { %v1103_v34 = vrot.slane %v1102_v9, 2  ;;  %v1076_v17 = vmax.f32 %v1044_v59, 0.0 }
 0x1fd   : > { %v1110_v21 = vrot.slane %v1109_v51, 2  ;;  %v1077_v38 = vmax.f32 %v1045_v25, 0.0 }
 0x1fe   : > { %v1104_v12 = vmax.f32 %v1102_v9, %v1103_v34  ;;  %v2714_v18 = vmax.f32 %v1074_v31, %v1076_v17  ;;  %v1143_v9 = vrot.slane %v2702_v20, 4 }
 0x1ff   : > { %v1111_v5 = vmax.f32 %v1109_v51, %v1110_v21  ;;  %v2716_v1 = vmax.f32 %v1075_v35, %v1077_v38  ;;  %v959_v27 = vpop.f32.mrb[8].mxu0 }
 0x200   : > { %v1105_v19 = vrot.slane %v1104_v12, 1  ;;  %v1030_v44 = vadd.f32 %v2686_v52, %v959_v27  ;;  %v961_v50 = vpop.f32.mrb[9].mxu0  ;;  %v1157_v51 = vrot.slane %v2714_v18, 4  ;;  %v1144_v27 = vmax.f32 %v2702_v20, %v1143_v9 }
 0x201   : > { %v1112_v0 = vrot.slane %v1111_v5, 1  ;;  %v1031_v45 = vadd.f32 %v2688_v32, %v961_v50  ;;  %v963_v13 = vpop.f32.mrb[10].mxu0  ;;  %v1164_v17 = vrot.slane %v2716_v1, 4 }
 0x202   : > { %v1106_v48 = vmax.f32 %v1104_v12, %v1105_v19  ;;  %v1032_v55 = vadd.f32 %v2690_v58, %v963_v13  ;;  %v965_v2 = vpop.f32.mrb[11].mxu0  ;;  %v1062_v61 = vmax.f32 %v1030_v44, 0.0  ;;  %v1158_v13 = vmax.f32 %v2714_v18, %v1157_v51 }
 0x203   : > { %v1113_v53 = vmax.f32 %v1111_v5, %v1112_v0  ;;  %v1033_v57 = vadd.f32 %v2693_v15, %v965_v2  ;;  %v1063_v42 = vmax.f32 %v1031_v45, 0.0  ;;  %v1151_v45 = vmax.f32 %v2704_v60, %v1150_v10 }
 0x204   : > { %v1254_v6 = vsel %vm1253_vm9, %v1106_v48, %v1092_v26  ;;  %v1064_v62 = vmax.f32 %v1032_v55, 0.0  ;;  %v1165_v55 = vmax.f32 %v2716_v1, %v1164_v17 }
 0x205   : > { %v1267_v7 = vsel %vm1253_vm9, %v1113_v53, %v1099_v49  ;;  %v1065_v4 = vmax.f32 %v1033_v57, 0.0  ;;  %v1152_v18 = vrot.slane %v1151_v45, 2 }
 0x206   : > { %v1114_v16 = vmax.f32 %v1062_v61, %v1064_v62 }
 0x207   : > { %v1121_v63 = vmax.f32 %v1063_v42, %v1065_v4  ;;  %v999_v24 = vpop.f32.mrb[8].mxu1  ;;  %v1145_v42 = vrot.slane %v1144_v27, 2 }
 0x208   : > { %v1115_v37 = vrot.slane %v1114_v16, 4  ;;  %v1046_v11 = vadd.f32 %v2686_v52, %v999_v24  ;;  %v1001_v41 = vpop.f32.mrb[9].mxu1 }
 0x209   : > { %v1122_v43 = vrot.slane %v1121_v63, 4  ;;  %v1047_v3 = vadd.f32 %v2688_v32, %v1001_v41  ;;  %v1003_v36 = vpop.f32.mrb[10].mxu1 }
 0x20a   : > { %v1116_v23 = vmax.f32 %v1114_v16, %v1115_v37  ;;  %v1048_v46 = vadd.f32 %v2690_v58, %v1003_v36  ;;  %v1005_v40 = vpop.f32.mrb[11].mxu1  ;;  %v1078_v8 = vmax.f32 %v1046_v11, 0.0  ;;  %v1159_v16 = vrot.slane %v1158_v13, 2 }
 0x20b   : > { %v1123_v28 = vmax.f32 %v1121_v63, %v1122_v43  ;;  %v1049_v14 = vadd.f32 %v2693_v15, %v1005_v40  ;;  %v1079_v30 = vmax.f32 %v1047_v3, 0.0  ;;  %v1166_v37 = vrot.slane %v1165_v55, 2 }
 0x20c   : > { %v1117_v39 = vrot.slane %v1116_v23, 2  ;;  %v1080_v29 = vmax.f32 %v1048_v46, 0.0 }
 0x20d   : > { %v1124_v54 = vrot.slane %v1123_v28, 2  ;;  %v1081_v47 = vmax.f32 %v1049_v14, 0.0  ;;  %v1153_v14 = vmax.f32 %v1151_v45, %v1152_v18 }
 0x20e   : > { %v1118_v59 = vmax.f32 %v1116_v23, %v1117_v39  ;;  %v1170_v22 = vmax.f32 %v1078_v8, %v1080_v29  ;;  %v1160_v39 = vmax.f32 %v1158_v13, %v1159_v16 }
 0x20f   : > { %v1125_v25 = vmax.f32 %v1123_v28, %v1124_v54  ;;  %v1177_v34 = vmax.f32 %v1079_v30, %v1081_v47  ;;  %v969_v31 = vpop.f32.mrb[12].mxu0  ;;  %v1167_v54 = vmax.f32 %v1165_v55, %v1166_v37 }
 0x210   : > { %v1119_v21 = vrot.slane %v1118_v59, 1  ;;  %v1034_v35 = vadd.f32 %v2686_v52, %v969_v31  ;;  %v971_v38 = vpop.f32.mrb[13].mxu0  ;;  %v1171_v12 = vrot.slane %v1170_v22, 4 }
 0x211   : > { %v1126_v33 = vrot.slane %v1125_v25, 1  ;;  %v1035_v56 = vadd.f32 %v2688_v32, %v971_v38  ;;  %v973_v5 = vpop.f32.mrb[14].mxu0  ;;  %v1178_v44 = vrot.slane %v1177_v34, 4 }
 0x212   : > { %v1120_v19 = vmax.f32 %v1118_v59, %v1119_v21  ;;  %v1036_v50 = vadd.f32 %v2690_v58, %v973_v5  ;;  %v975_v0 = vpop.f32.mrb[15].mxu0  ;;  %v1066_v49 = vmax.f32 %v1034_v35, 0.0  ;;  %v1172_v20 = vmax.f32 %v1170_v22, %v1171_v12 }
 0x213   : > { %v1127_v26 = vmax.f32 %v1125_v25, %v1126_v33  ;;  %v1037_v48 = vadd.f32 %v2693_v15, %v975_v0  ;;  %v1067_v57 = vmax.f32 %v1035_v56, 0.0  ;;  %v1179_v60 = vmax.f32 %v1177_v34, %v1178_v44 }
 0x214   : > { %v2739_v2 = vsel %vm1255_vm10, %v1120_v19, %v1254_v6  ;;  %v1068_v53 = vmax.f32 %v1036_v50, 0.0  ;;  %v1173_v41 = vrot.slane %v1172_v20, 2  ;;  %v1161_v21 = vrot.slane %v1160_v39, 1 }
 0x215   : > { %v1069_v61 = vmax.f32 %v1037_v48, 0.0  ;;  %v2742_v62 = vsel %vm1255_vm10, %v1127_v26, %v1267_v7  ;;  %v1146_v7 = vmax.f32 %v1144_v27, %v1145_v42  ;;  %v1180_v23 = vrot.slane %v1179_v60, 2 }
 0x216   : > { %v1128_v4 = vmax.f32 %v1066_v49, %v1068_v53  ;;  %v1174_v9 = vmax.f32 %v1172_v20, %v1173_v41  ;;  %v1168_v35 = vrot.slane %v1167_v54, 1  ;;  %v1162_v13 = vmax.f32 %v1160_v39, %v1161_v21 }
 0x217   : > { %v1135_v63 = vmax.f32 %v1067_v57, %v1069_v61  ;;  %v1009_v24 = vpop.f32.mrb[12].mxu1  ;;  %v1181_v10 = vmax.f32 %v1179_v60, %v1180_v23  ;;  %v1147_v34 = vrot.slane %v1146_v7, 1 }
 0x218   : > { %v1129_v1 = vrot.slane %v1128_v4, 4  ;;  %v1050_v6 = vadd.f32 %v2686_v52, %v1009_v24  ;;  %v1011_v11 = vpop.f32.mrb[13].mxu1  ;;  %v1175_v33 = vrot.slane %v1174_v9, 1  ;;  %v1169_v26 = vmax.f32 %v1167_v54, %v1168_v35 }
 0x219   : > { %v1136_v43 = vrot.slane %v1135_v63, 4  ;;  %v1051_v3 = vadd.f32 %v2688_v32, %v1011_v11  ;;  %v1013_v36 = vpop.f32.mrb[14].mxu1  ;;  %v1182_v5 = vrot.slane %v1181_v10, 1  ;;  %v1148_v44 = vmax.f32 %v1146_v7, %v1147_v34 }
 0x21a   : > { %v1130_v46 = vmax.f32 %v1128_v4, %v1129_v1  ;;  %v1052_v40 = vadd.f32 %v2690_v58, %v1013_v36  ;;  %v1015_v28 = vpop.f32.mrb[15].mxu1  ;;  %v1082_v30 = vmax.f32 %v1050_v6, 0.0  ;;  %v1154_v58 = vrot.slane %v1153_v14, 1 }
 0x21b   : > { %v1137_v8 = vmax.f32 %v1135_v63, %v1136_v43  ;;  %v1053_v29 = vadd.f32 %v2693_v15, %v1015_v28  ;;  %v1083_v32 = vmax.f32 %v1051_v3, 0.0  ;;  %v1176_v49 = vmax.f32 %v1174_v9, %v1175_v33  ;;  %v1533_v43 = vld [vmem:[%s2814_s4] ss:$0 sm:$0xff] }
 0x21c   : > { %v1131_v52 = vrot.slane %v1130_v46, 2  ;;  %v1084_v47 = vmax.f32 %v1052_v40, 0.0  ;;  %v1155_v50 = vmax.f32 %v1153_v14, %v1154_v58  ;;  %v1183_v42 = vmax.f32 %v1181_v10, %v1182_v5 }
 0x21d   : > { %v1138_v59 = vrot.slane %v1137_v8, 2  ;;  %v1085_v22 = vmax.f32 %v1053_v29, 0.0 }
 0x21e   : > { %v1132_v51 = vmax.f32 %v1130_v46, %v1131_v52  ;;  %v1184_v25 = vmax.f32 %v1082_v30, %v1084_v47 }
 0x21f   : > { %v1139_v31 = vmax.f32 %v1137_v8, %v1138_v59  ;;  %v1191_v17 = vmax.f32 %v1083_v32, %v1085_v22 }
 0x220   : > { %v1133_v38 = vrot.slane %v1132_v51, 1  ;;  %v1185_v15 = vrot.slane %v1184_v25, 4 }
 0x221   : > { %v1140_v12 = vrot.slane %v1139_v31, 1  ;;  %v1192_v56 = vrot.slane %v1191_v17, 4 }
 0x222   : > { %v1134_v27 = vmax.f32 %v1132_v51, %v1133_v38  ;;  %v1186_v19 = vmax.f32 %v1184_v25, %v1185_v15 }
 0x223   : > { %v1141_v0 = vmax.f32 %v1139_v31, %v1140_v12  ;;  %v1193_v45 = vmax.f32 %v1191_v17, %v1192_v56 }
 0x224   : > { %v1187_v48 = vrot.slane %v1186_v19, 2  ;;  %v1258_v55 = vsel %vm1257_vm11, %v1134_v27, %v2739_v2 }
 0x225   : > { %v1194_v53 = vrot.slane %v1193_v45, 2  ;;  %v1269_v20 = vsel %vm1257_vm11, %v1141_v0, %v2742_v62  ;;  %v1260_v57 = vsel %vm1259_vm12, %v1148_v44, %v1258_v55 }
 0x226   : > { %v1188_v61 = vmax.f32 %v1186_v19, %v1187_v48  ;;  %v1270_v60 = vsel %vm1259_vm12, %v1155_v50, %v1269_v20  ;;  %v1262_v4 = vsel %vm1261_vm13, %v1162_v13, %v1260_v57 }
 0x227   : > { %v1195_v18 = vmax.f32 %v1193_v45, %v1194_v53  ;;  %v1271_v16 = vsel %vm1261_vm13, %v1169_v26, %v1270_v60  ;;  %v1264_v63 = vsel %vm1263_vm14, %v1176_v49, %v1262_v4 }
 0x228   : > { %v1189_v24 = vrot.slane %v1188_v61, 1  ;;  %v1272_v2 = vsel %vm1263_vm14, %v1183_v42, %v1271_v16 }
 0x229   : > { %v1196_v37 = vrot.slane %v1195_v18, 1 }
 0x22a   : > { %v1190_v1 = vmax.f32 %v1188_v61, %v1189_v24 }
 0x22b   : > { %v1197_v62 = vmax.f32 %v1195_v18, %v1196_v37 }
 0x22c   : > { %v1266_v6 = vsel %vm1265_vm15, %v1190_v1, %v1264_v63 }
 0x22d   : > { %v1273_v11 = vsel %vm1265_vm15, %v1197_v62, %v1272_v2 }
 0x22e   : > { %1340 = vmatprep.mubr.f32.mxu1 %v1273_v11 }
 0x22f   : > { %1341 = vmatmul.mubr.f32.vlgmr.msra.gmra.mrb[16].mxu1 %v1266_v6 }
 0x302   : > { %v1572_v41 = vpop.f32.mrb[16].mxu1 }
 0x303   : > { %v1573_v3 = vpop.f32.mrb[17].mxu1 }
 0x304   : > { %v1574_v36 = vadd.f32 %v1573_v3, %v1572_v41 }
 0x306   : > { %v1343_v7 = vadd.f32 %v1574_v36, %v1533_v43 }
 0x308   : > { %1346 = vmax.xlane.f32.xlu0 %v1343_v7 }
 0x395   : > { %v1347_v23 = vpop.xlane.xlu0 %1346 }
 0x396   : > { %v1348_v46 = vsub.f32 %v1343_v7, %v1347_v23 }
 0x398   : > { %v1349_v40 = vmul.f32 1.442695, %v1348_v46 }
 0x39a   : > { %1785 = vpow2.f32 %v1349_v40 }
 0x3a4   : > { %v1786_v28 = vpop.eup %1785 }
 0x3a5   : > { %1351 = vadd.xlane.f32.xlu1 %v1786_v28 }
 0x432   : > { %v1352_v14 = vpop.xlane.xlu1 %1351 }
 0x433   : > { %1787 = vlog2.f32 %v1352_v14 }
 0x43d   : > { %v1788_v39 = vpop.eup %1787 }
 0x43e   : > { %v1354_v8 = vmul.f32 0.6931472, %v1788_v39 }
 0x440   : > { %v1355_v29 = vadd.f32 %v1354_v8, %v1347_v23 }
 0x442   : > { %v1356_v54 = vsub.f32 %v1343_v7, %v1355_v29 }
 0x444   : > { %1357 = vst [vmem:[%s287_s13] sm:$0xff] %v1356_v54 }
 0x445   : > { %1916 = shalt.err (!%p1913_p4)
}
 0x446   : > { %s1917_s12 = scalar_lea.hbm %s2766_s29, 128  ;;  %s1921_s14 = scalar_lea.hbm %s2815_s5, 256 }
 0x447   : > { %p1918_p9 = scmp.ne.s32.totalorder %s2766_s29, %s1917_s12  ;;  %p1922_p8 = scmp.lt.u32.totalorder %s2766_s29, %s2815_s5 }
 0x448   : > { %p1923_p13 = scmp.lt.u32.totalorder %s1921_s14, %s1917_s12  ;;  %p1925_p10 = scmp.lt.u32.totalorder %s1917_s12, %s2766_s29 }
 0x449   : > { %p1919_p0 = pnand %p1918_p9, %p2172_p5 }
 0x44a   : > { %p1924_p6 = por %p1923_p13, %p1922_p8 }
 0x44b   : > { %p1920_p11 = pneg %p1919_p0 }
 0x44c   : > { %p1926_p3 = por %p1925_p10, %p1924_p6 }
 0x44e   : > { %p1927_p7 = pnand %p1926_p3, %p1920_p11 }
 0x450   : > { %1930 = shalt.err (!%p1927_p7)
}
 0x451   : > { %1651 = dma.vmem_to_hbm [thread:$0]  (%p2172_p5), %s2768_s28, 128, %s2766_s29, %s1359_s9  }
 0x452 PF: > { %s1384_s11 = sand.u32 1, %s1965_s18   ;;  %p2837_p12 = scmp.ne.s32.totalorder %s2822_s25, 0 }
 0x453   : > { %p2838_p1 = scmp.ge.s32.totalorder %s1977_s21, 2  ;;  %s1385_s13 = scalar_lea.sflag [#allocation4], %s1384_s11 }
 0x455   : > { %p1668_p2 = pnand %p2838_p1, %p2837_p12 }
 0x457   : > { %1960 = dma.done.wait (!%p1668_p2), %s1385_s13, 128  }
 0x458   : > { %1962 = vsyncadd (!%p1668_p2), %s1385_s13, 4294967168  ;;  %p20_p4 = scmp.ge.s32.totalorder %s2137_s8, 4   ;;  %s2839_s18 = smov %s1969_s19 }
 0x459   : > { %s2840_s19 = smov %s1973_s20  ;;  %s2841_s20 = smov %s2168_s23 }
 0x45a   : > { %s2842_s21 = smov %s2137_s8  ;;  %22 = sbr.rel (!%p20_p4) target bundleno = 7 (0x7), region = 97 }
 0x461   :  { %1390 = vsyncpa [#allocation3], 1 }
 0x462   :  { %1392 = vsyncpa [#allocation3 + $0x1], 1 }
 0x463   :  { %1393 = vsyncpa [#allocation6], 1 }
 0x464   :  { %1394 = vsyncpa [#allocation9], 1 }
 0x465   :  { %1395 = vsyncpa [#allocation4], 1 }
 0x466   :  { %1397 = vsyncpa [#allocation4 + $0x1], 1 }

</bundles_post_ra>
